<compile_context>
chip_gen: v6e
topology: v6e:2x2x1
jax: 0.10.0
libtpu: 0.0.40
codegen_flags: <defaults>
</compile_context>

<pallas_src>
import functools

import jax
import jax.numpy as jnp
from jax import lax
from jax.experimental import pallas as pl
from jax.experimental.pallas import tpu as pltpu


def _tile(dim, cap):
    t = min(cap, dim)
    assert dim % t == 0, f"dim {dim} not divisible by tile {t}"
    return t


# ------------------------- tiled matmul (MXU, bf16 in / f32 acc) -------------

def _matmul_kernel(x_ref, w_ref, o_ref, acc_ref):
    @pl.when(pl.program_id(2) == 0)
    def _():
        acc_ref[...] = jnp.zeros_like(acc_ref)

    acc_ref[...] += jnp.dot(x_ref[...], w_ref[...],
                            preferred_element_type=jnp.float32)

    @pl.when(pl.program_id(2) == pl.num_programs(2) - 1)
    def _():
        o_ref[...] = acc_ref[...].astype(o_ref.dtype)


def pallas_matmul(x, w, *, tm=256, tn=256, tk=512):
    M, K = x.shape
    K2, N = w.shape
    assert K == K2
    tm, tn, tk = _tile(M, tm), _tile(N, tn), _tile(K, tk)
    return pl.pallas_call(
        _matmul_kernel,
        grid=(M // tm, N // tn, K // tk),
        in_specs=[
            pl.BlockSpec((tm, tk), lambda i, j, k: (i, k)),
            pl.BlockSpec((tk, tn), lambda i, j, k: (k, j)),
        ],
        out_specs=pl.BlockSpec((tm, tn), lambda i, j, k: (i, j)),
        out_shape=jax.ShapeDtypeStruct((M, N), x.dtype),
        scratch_shapes=[pltpu.VMEM((tm, tn), jnp.float32)],
        compiler_params=pltpu.CompilerParams(
            dimension_semantics=("parallel", "parallel", "arbitrary")),
    )(x, w)


# ----------------- down-projection matmul with fused SiluAndMul --------------

def _silu_down_kernel(g_ref, u_ref, w_ref, o_ref, acc_ref):
    @pl.when(pl.program_id(2) == 0)
    def _():
        acc_ref[...] = jnp.zeros_like(acc_ref)

    g = g_ref[...].astype(jnp.float32)
    u = u_ref[...].astype(jnp.float32)
    a = (g * jax.nn.sigmoid(g) * u).astype(w_ref.dtype)   # bf16 into the MXU
    acc_ref[...] += jnp.dot(a, w_ref[...], preferred_element_type=jnp.float32)

    @pl.when(pl.program_id(2) == pl.num_programs(2) - 1)
    def _():
        o_ref[...] = acc_ref[...].astype(o_ref.dtype)


def pallas_silu_mul_down(gate_up, w_down, *, tm=256, tn=256, tk=512):
    # gate_up: [T, 2*inter] (gate = cols [0, inter), up = cols [inter, 2*inter))
    M, two_i = gate_up.shape
    inter = two_i // 2
    K, N = w_down.shape
    assert K == inter
    tm, tn, tk = _tile(M, tm), _tile(N, tn), _tile(inter, tk)
    kb = inter // tk
    return pl.pallas_call(
        _silu_down_kernel,
        grid=(M // tm, N // tn, kb),
        in_specs=[
            pl.BlockSpec((tm, tk), lambda i, j, k: (i, k)),        # gate half
            pl.BlockSpec((tm, tk), lambda i, j, k: (i, k + kb)),   # up half
            pl.BlockSpec((tk, tn), lambda i, j, k: (k, j)),
        ],
        out_specs=pl.BlockSpec((tm, tn), lambda i, j, k: (i, j)),
        out_shape=jax.ShapeDtypeStruct((M, N), gate_up.dtype),
        scratch_shapes=[pltpu.VMEM((tm, tn), jnp.float32)],
        compiler_params=pltpu.CompilerParams(
            dimension_semantics=("parallel", "parallel", "arbitrary")),
    )(gate_up, gate_up, w_down)


# ------------------------------ RMSNorm kernels ------------------------------

def _rmsnorm_kernel(x_ref, w_ref, o_ref, *, eps):
    x = x_ref[...].astype(jnp.float32)
    var = jnp.mean(x * x, axis=-1, keepdims=True)
    y = x * lax.rsqrt(var + eps) * w_ref[...].astype(jnp.float32)
    o_ref[...] = y.astype(o_ref.dtype)


def pallas_rmsnorm(x, w, eps, *, tb=256):
    T, Hd = x.shape
    tb = _tile(T, tb)
    return pl.pallas_call(
        functools.partial(_rmsnorm_kernel, eps=eps),
        grid=(T // tb,),
        in_specs=[
            pl.BlockSpec((tb, Hd), lambda i: (i, 0)),
            pl.BlockSpec((1, Hd), lambda i: (0, 0)),
        ],
        out_specs=pl.BlockSpec((tb, Hd), lambda i: (i, 0)),
        out_shape=jax.ShapeDtypeStruct(x.shape, x.dtype),
        compiler_params=pltpu.CompilerParams(dimension_semantics=("parallel",)),
    )(x, w.reshape(1, Hd))


def _rmsnorm_add_kernel(x_ref, r_ref, w_ref, o_ref, nr_ref, *, eps):
    # vLLM fused-residual RMSNorm: residual' = x + residual; out = RMSNorm(residual')*w
    r = x_ref[...].astype(jnp.float32) + r_ref[...].astype(jnp.float32)
    nr_ref[...] = r.astype(nr_ref.dtype)
    var = jnp.mean(r * r, axis=-1, keepdims=True)
    y = r * lax.rsqrt(var + eps) * w_ref[...].astype(jnp.float32)
    o_ref[...] = y.astype(o_ref.dtype)


def pallas_rmsnorm_add(x, residual, w, eps, *, tb=256):
    T, Hd = x.shape
    tb = _tile(T, tb)
    return pl.pallas_call(
        functools.partial(_rmsnorm_add_kernel, eps=eps),
        grid=(T // tb,),
        in_specs=[
            pl.BlockSpec((tb, Hd), lambda i: (i, 0)),
            pl.BlockSpec((tb, Hd), lambda i: (i, 0)),
            pl.BlockSpec((1, Hd), lambda i: (0, 0)),
        ],
        out_specs=[
            pl.BlockSpec((tb, Hd), lambda i: (i, 0)),
            pl.BlockSpec((tb, Hd), lambda i: (i, 0)),
        ],
        out_shape=(
            jax.ShapeDtypeStruct(x.shape, x.dtype),
            jax.ShapeDtypeStruct(x.shape, x.dtype),
        ),
        compiler_params=pltpu.CompilerParams(dimension_semantics=("parallel",)),
    )(x, residual, w.reshape(1, Hd))


# -------------- flash-style causal GQA attention with fused RoPE -------------

def _neox_rope(x, cos, sin):
    # neox (rotate-half) rotary embedding, f32 math.
    half = x.shape[-1] // 2
    x1 = x[..., :half]
    x2 = x[..., half:]
    return jnp.concatenate([x1 * cos - x2 * sin, x2 * cos + x1 * sin], axis=-1)


def _flash_attn_kernel(q_ref, k_ref, v_ref, cq_ref, sq_ref, ck_ref, sk_ref,
                       o_ref, m_sc, l_sc, acc_sc, *, scale, tq, tk):
    qi = pl.program_id(1)
    ki = pl.program_id(2)
    group = q_ref.shape[0]

    @pl.when(ki == 0)
    def _():
        m_sc[...] = jnp.full_like(m_sc, -jnp.inf)
        l_sc[...] = jnp.zeros_like(l_sc)
        acc_sc[...] = jnp.zeros_like(acc_sc)

    # Causal block skip: only compute when the K block overlaps the lower
    # triangle of this Q block.
    @pl.when(ki * tk < (qi + 1) * tq)
    def _():
        # RoPE folded into the Q/K load epilogue (f32 math, bf16 MXU inputs).
        q = _neox_rope(q_ref[...].astype(jnp.float32), cq_ref[...], sq_ref[...])
        q = (q * scale).astype(q_ref.dtype)                      # [G, tq, D]
        kk = _neox_rope(k_ref[0].astype(jnp.float32), ck_ref[...], sk_ref[...])
        kk = jnp.broadcast_to(kk.astype(k_ref.dtype),
                              (group,) + kk.shape)               # [G, tk, D]

        s = jnp.einsum("gqd,gkd->gqk", q, kk,
                       preferred_element_type=jnp.float32)       # [G, tq, tk]
        q_pos = qi * tq + lax.broadcasted_iota(jnp.int32, s.shape, 1)
        k_pos = ki * tk + lax.broadcasted_iota(jnp.int32, s.shape, 2)
        s = jnp.where(k_pos <= q_pos, s, -jnp.inf)

        m_prev = m_sc[...]
        m_new = jnp.maximum(m_prev, jnp.max(s, axis=-1, keepdims=True))
        alpha = jnp.exp(m_prev - m_new)
        p = jnp.exp(s - m_new)
        l_sc[...] = alpha * l_sc[...] + jnp.sum(p, axis=-1, keepdims=True)
        v = jnp.broadcast_to(v_ref[0], (group,) + v_ref.shape[1:])   # [G, tk, D]
        acc_sc[...] = alpha * acc_sc[...] + jnp.einsum(
            "gqk,gkd->gqd", p.astype(v.dtype), v,
            preferred_element_type=jnp.float32)
        m_sc[...] = m_new

    @pl.when(ki == pl.num_programs(2) - 1)
    def _():
        inv_l = pl.reciprocal(l_sc[...], approx=True)
        o_ref[...] = (acc_sc[...] * inv_l).astype(o_ref.dtype)


def pallas_flash_gqa_attention(q, k, v, cos, sin, scale, *, tq=128, tk=128):
    # q: [H, T, D]; k/v: [KV, T, D]; cos/sin: [T, D//2]. Causal GQA attention.
    H, T, D = q.shape
    KV = k.shape[0]
    assert H % KV == 0 and D % 2 == 0
    group = H // KV
    Dh = D // 2
    tq, tk = _tile(T, tq), _tile(T, tk)
    kernel = functools.partial(_flash_attn_kernel, scale=scale, tq=tq, tk=tk)
    return pl.pallas_call(
        kernel,
        grid=(KV, T // tq, T // tk),
        in_specs=[
            # whole query-head group shares one K/V tile (GQA reuse).
            pl.BlockSpec((group, tq, D), lambda kv, qi, ki: (kv, qi, 0)),
            pl.BlockSpec((1, tk, D), lambda kv, qi, ki: (kv, ki, 0)),
            pl.BlockSpec((1, tk, D), lambda kv, qi, ki: (kv, ki, 0)),
            pl.BlockSpec((tq, Dh), lambda kv, qi, ki: (qi, 0)),   # cos (q rows)
            pl.BlockSpec((tq, Dh), lambda kv, qi, ki: (qi, 0)),   # sin (q rows)
            pl.BlockSpec((tk, Dh), lambda kv, qi, ki: (ki, 0)),   # cos (k rows)
            pl.BlockSpec((tk, Dh), lambda kv, qi, ki: (ki, 0)),   # sin (k rows)
        ],
        out_specs=pl.BlockSpec((group, tq, D), lambda kv, qi, ki: (kv, qi, 0)),
        out_shape=jax.ShapeDtypeStruct((H, T, D), q.dtype),
        scratch_shapes=[
            pltpu.VMEM((group, tq, 1), jnp.float32),   # running max
            pltpu.VMEM((group, tq, 1), jnp.float32),   # running sum
            pltpu.VMEM((group, tq, D), jnp.float32),   # output accumulator
        ],
        compiler_params=pltpu.CompilerParams(
            dimension_semantics=("parallel", "parallel", "arbitrary")),
    )(q, k, v, cos, sin, cos, sin)


# ----------------------------- model definition ------------------------------

class ExaoneConfig:
    vocab_size = 128
    hidden_size = 64
    num_attention_heads = 4
    num_key_value_heads = 2
    head_dim = 16                  # hidden_size // num_attention_heads
    intermediate_size = 128
    num_hidden_layers = 2
    rope_theta = 10000.0
    layer_norm_epsilon = 1e-5
    max_position_embeddings = 8192


def init_params(cfg, key):
    def nrm(k, shape, scale=0.02):
        return (scale * jax.random.normal(k, shape, dtype=jnp.float32)
                ).astype(jnp.bfloat16)

    keys = jax.random.split(key, 2 + cfg.num_hidden_layers)
    params = {
        "wte": nrm(keys[0], (cfg.vocab_size, cfg.hidden_size)),
        "ln_f": jnp.ones((cfg.hidden_size,), jnp.bfloat16),
        "layers": [],
    }
    q_size = cfg.num_attention_heads * cfg.head_dim
    kv_size = cfg.num_key_value_heads * cfg.head_dim
    for li in range(cfg.num_hidden_layers):
        lk = jax.random.split(keys[2 + li], 4)
        params["layers"].append({
            "ln1": jnp.ones((cfg.hidden_size,), jnp.bfloat16),
            "ln2": jnp.ones((cfg.hidden_size,), jnp.bfloat16),
            # weights stored as [in, out] so forward is x @ W
            "wqkv": nrm(lk[0], (cfg.hidden_size, q_size + 2 * kv_size)),
            "wo": nrm(lk[1], (q_size, cfg.hidden_size)),
            "w_gate_up": nrm(lk[2], (cfg.hidden_size, 2 * cfg.intermediate_size)),
            "w_down": nrm(lk[3], (cfg.intermediate_size, cfg.hidden_size)),
        })
    return params


def rope_cos_sin(cfg, positions):
    half = cfg.head_dim // 2
    inv_freq = 1.0 / (cfg.rope_theta ** (
        jnp.arange(0, half, dtype=jnp.float32) * 2.0 / cfg.head_dim))
    freqs = positions.astype(jnp.float32)[:, None] * inv_freq[None, :]  # [T, D/2]
    return jnp.cos(freqs), jnp.sin(freqs)


def decoder_layer(cfg, lp, cos, sin, hidden, residual):
    eps = cfg.layer_norm_epsilon
    H, KV, D = cfg.num_attention_heads, cfg.num_key_value_heads, cfg.head_dim
    T = hidden.shape[0]
    q_size = H * D
    kv_size = KV * D

    # ln_1 (+ fused residual add after the first layer)
    if residual is None:
        residual = hidden
        hidden = pallas_rmsnorm(hidden, lp["ln1"], eps)
    else:
        hidden, residual = pallas_rmsnorm_add(hidden, residual, lp["ln1"], eps)

    # attention (RoPE fused into the flash attention kernel)
    qkv = pallas_matmul(hidden, lp["wqkv"])                        # [T, q+2kv]
    # TODO(synk): head split/merge kept as XLA glue — column-sliced BlockSpecs
    # on the token-major [T, H*D] tensor would need head_dim >= 128 lanes.
    q = qkv[:, :q_size].reshape(T, H, D).transpose(1, 0, 2)        # [H, T, D]
    k = qkv[:, q_size:q_size + kv_size].reshape(T, KV, D).transpose(1, 0, 2)
    v = qkv[:, q_size + kv_size:].reshape(T, KV, D).transpose(1, 0, 2)

    attn = pallas_flash_gqa_attention(q, k, v, cos, sin, scale=D ** -0.5)
    attn = attn.transpose(1, 0, 2).reshape(T, q_size)
    hidden = pallas_matmul(attn, lp["wo"])                         # [T, hidden]

    # ln_2 + residual
    hidden, residual = pallas_rmsnorm_add(hidden, residual, lp["ln2"], eps)

    # gated MLP: gate_up matmul, then SiluAndMul fused into the down matmul
    gate_up = pallas_matmul(hidden, lp["w_gate_up"])               # [T, 2*inter]
    hidden = pallas_silu_mul_down(gate_up, lp["w_down"])           # [T, hidden]
    return hidden, residual


def exaone_forward(cfg, params, input_ids, positions):
    # token embedding (gather) — plain JAX glue.
    # TODO(synk): embedding gather left in JAX; no clean small-scale Pallas gather.
    hidden = jnp.take(params["wte"], input_ids, axis=0)            # [T, hidden]
    residual = None
    cos, sin = rope_cos_sin(cfg, positions)
    for lp in params["layers"]:
        hidden, residual = decoder_layer(cfg, lp, cos, sin, hidden, residual)
    hidden, _ = pallas_rmsnorm_add(hidden, residual, params["ln_f"],
                                   cfg.layer_norm_epsilon)
    return hidden                                                  # [T, hidden]


# --------------------------------- main ---------------------------------------

if __name__ == "__main__":
    cfg = ExaoneConfig()
    T = 8

    key = jax.random.PRNGKey(0)
    pkey, ikey = jax.random.split(key)
    params = init_params(cfg, pkey)

    input_ids = jax.random.randint(ikey, (T,), 0, cfg.vocab_size, dtype=jnp.int32)
    positions = jnp.arange(T, dtype=jnp.int32)

    out = jax.jit(lambda ids, pos: exaone_forward(cfg, params, ids, pos))(
        input_ids, positions)
    jax.block_until_ready(out)
    assert out.shape == (T, cfg.hidden_size)
    assert bool(jnp.all(jnp.isfinite(out.astype(jnp.float32))))
    print("KERNEL_OK")
</pallas_src>

<mosaic_0001>
module attributes {stable_mosaic.version = 11 : i64} {
  func.func @_matmul_kernel(%arg0: i32, %arg1: i32, %arg2: i32, %arg3: memref<8x64xbf16, #tpu.memory_space<vmem>>, %arg4: memref<64x128xbf16, #tpu.memory_space<vmem>>, %arg5: memref<8x128xbf16, #tpu.memory_space<vmem>>, %arg6: memref<8x128xf32, #tpu.memory_space<vmem>>) attributes {dimension_semantics = [#tpu.dimension_semantics<parallel>, #tpu.dimension_semantics<parallel>, #tpu.dimension_semantics<arbitrary>], iteration_bounds = array<i64: 1, 1, 1>, scalar_prefetch = 0 : i64, scratch_operands = 1 : i64, tpu.core_type = #tpu.core_type<tc>, window_params = [{transform_indices = @transform_0, window_bounds = array<i64: 8, 64>}, {transform_indices = @transform_1, window_bounds = array<i64: 64, 128>}, {transform_indices = @transform_2, window_bounds = array<i64: 8, 128>}]} {
    %c0_i32 = arith.constant 0 : i32
    %0 = arith.cmpi eq, %arg2, %c0_i32 : i32
    %1 = arith.extui %0 : i1 to i32
    %c0_i32_0 = arith.constant 0 : i32
    %2 = arith.cmpi ne, %1, %c0_i32_0 : i32
    scf.if %2 {
      %cst_10 = arith.constant 0.000000e+00 : f32
      %12 = vector.broadcast %cst_10 : f32 to vector<8x128xf32>
      %c0_11 = arith.constant 0 : index
      %c0_12 = arith.constant 0 : index
      %13 = vector.load %arg6[%c0_11, %c0_12] : memref<8x128xf32, #tpu.memory_space<vmem>>, vector<8x128xf32>
      tpu.vector_store %arg6[%c0_11, %c0_12], %12 {strides = array<i32>} : memref<8x128xf32, #tpu.memory_space<vmem>>, vector<8x128xf32>,
    } else {
    }
    %c0 = arith.constant 0 : index
    %c0_1 = arith.constant 0 : index
    %3 = vector.load %arg6[%c0, %c0_1] : memref<8x128xf32, #tpu.memory_space<vmem>>, vector<8x128xf32>
    %c0_2 = arith.constant 0 : index
    %c0_3 = arith.constant 0 : index
    %4 = vector.load %arg3[%c0_2, %c0_3] : memref<8x64xbf16, #tpu.memory_space<vmem>>, vector<8x64xbf16>
    %c0_4 = arith.constant 0 : index
    %c0_5 = arith.constant 0 : index
    %5 = vector.load %arg4[%c0_4, %c0_5] : memref<64x128xbf16, #tpu.memory_space<vmem>>, vector<64x128xbf16>
    %cst = arith.constant dense<0.000000e+00> : vector<8x128xf32>
    %6 = tpu.matmul %4, %5, %cst {dimension_numbers = #tpu.dot_dimension_numbers<[1], [0], [0], [1], [0, 0, 1, 1], [], []>} : vector<8x64xbf16>, vector<64x128xbf16>, vector<8x128xf32> -> vector<8x128xf32>
    %7 = arith.addf %3, %6 : vector<8x128xf32>
    %c0_6 = arith.constant 0 : index
    %c0_7 = arith.constant 0 : index
    %8 = vector.load %arg6[%c0_6, %c0_7] : memref<8x128xf32, #tpu.memory_space<vmem>>, vector<8x128xf32>
    tpu.vector_store %arg6[%c0_6, %c0_7], %7 {strides = array<i32>} : memref<8x128xf32, #tpu.memory_space<vmem>>, vector<8x128xf32>,
    %c0_i32_8 = arith.constant 0 : i32
    %9 = arith.cmpi eq, %arg2, %c0_i32_8 : i32
    %10 = arith.extui %9 : i1 to i32
    %c0_i32_9 = arith.constant 0 : i32
    %11 = arith.cmpi ne, %10, %c0_i32_9 : i32
    scf.if %11 {
      %c0_10 = arith.constant 0 : index
      %c0_11 = arith.constant 0 : index
      %12 = vector.load %arg6[%c0_10, %c0_11] : memref<8x128xf32, #tpu.memory_space<vmem>>, vector<8x128xf32>
      %13 = arith.truncf %12 : vector<8x128xf32> to vector<8x128xbf16>
      %c0_12 = arith.constant 0 : index
      %c0_13 = arith.constant 0 : index
      %14 = vector.load %arg5[%c0_12, %c0_13] : memref<8x128xbf16, #tpu.memory_space<vmem>>, vector<8x128xbf16>
      tpu.vector_store %arg5[%c0_12, %c0_13], %13 {strides = array<i32>} : memref<8x128xbf16, #tpu.memory_space<vmem>>, vector<8x128xbf16>,
    } else {
    }
    return
  }
  func.func @transform_0(%arg0: i32, %arg1: i32, %arg2: i32) -> (i32, i32) {
    %c0_i32 = arith.constant 0 : i32
    return %arg0, %arg2 : i32, i32
  }
  func.func @transform_1(%arg0: i32, %arg1: i32, %arg2: i32) -> (i32, i32) {
    %c0_i32 = arith.constant 0 : i32
    return %arg2, %arg1 : i32, i32
  }
  func.func @transform_2(%arg0: i32, %arg1: i32, %arg2: i32) -> (i32, i32) {
    %c0_i32 = arith.constant 0 : i32
    return %arg0, %arg1 : i32, i32
  }
}

module attributes {stable_mosaic.version = 11 : i64} {
  func.func @_rmsnorm_kernel(%arg0: i32, %arg1: memref<8x64xbf16, #tpu.memory_space<vmem>>, %arg2: memref<1x64xbf16, #tpu.memory_space<vmem>>, %arg3: memref<8x64xbf16, #tpu.memory_space<vmem>>) attributes {dimension_semantics = [#tpu.dimension_semantics<parallel>], iteration_bounds = array<i64: 1>, scalar_prefetch = 0 : i64, scratch_operands = 0 : i64, tpu.core_type = #tpu.core_type<tc>, window_params = [{transform_indices = @transform_0, window_bounds = array<i64: 8, 64>}, {pipeline_mode = #tpu.pipeline_mode<synchronous>, transform_indices = @transform_1, window_bounds = array<i64: 1, 64>}, {transform_indices = @transform_2, window_bounds = array<i64: 8, 64>}]} {
    %c0 = arith.constant 0 : index
    %c0_0 = arith.constant 0 : index
    %0 = vector.load %arg1[%c0, %c0_0] : memref<8x64xbf16, #tpu.memory_space<vmem>>, vector<8x64xbf16>
    %1 = arith.extf %0 : vector<8x64xbf16> to vector<8x64xf32>
    %2 = arith.mulf %1, %1 : vector<8x64xf32>
    %cst = arith.constant dense<0.000000e+00> : vector<8xf32>
    %3 = vector.multi_reduction <add>, %2, %cst [1] : vector<8x64xf32> to vector<8xf32>
    %4 = vector.shape_cast %3 : vector<8xf32> to vector<8x1xf32>
    %cst_1 = arith.constant 6.400000e+01 : f32
    %5 = vector.broadcast %cst_1 : f32 to vector<8x1xf32>
    %6 = arith.divf %4, %5 : vector<8x1xf32>
    %cst_2 = arith.constant 9.99999974E-6 : f32
    %7 = vector.broadcast %cst_2 : f32 to vector<8x1xf32>
    %8 = arith.addf %6, %7 : vector<8x1xf32>
    %9 = math.rsqrt %8 : vector<8x1xf32>
    %10 = vector.broadcast %9 : vector<8x1xf32> to vector<8x64xf32>
    %11 = arith.mulf %1, %10 : vector<8x64xf32>
    %c0_3 = arith.constant 0 : index
    %c0_4 = arith.constant 0 : index
    %12 = vector.load %arg2[%c0_3, %c0_4] : memref<1x64xbf16, #tpu.memory_space<vmem>>, vector<1x64xbf16>
    %13 = arith.extf %12 : vector<1x64xbf16> to vector<1x64xf32>
    %14 = vector.broadcast %13 : vector<1x64xf32> to vector<8x64xf32>
    %15 = arith.mulf %11, %14 : vector<8x64xf32>
    %16 = arith.truncf %15 : vector<8x64xf32> to vector<8x64xbf16>
    %c0_5 = arith.constant 0 : index
    %c0_6 = arith.constant 0 : index
    %17 = vector.load %arg3[%c0_5, %c0_6] : memref<8x64xbf16, #tpu.memory_space<vmem>>, vector<8x64xbf16>
    tpu.vector_store %arg3[%c0_5, %c0_6], %16 {strides = array<i32>} : memref<8x64xbf16, #tpu.memory_space<vmem>>, vector<8x64xbf16>,
    return
  }
  func.func @transform_0(%arg0: i32) -> (i32, i32) {
    %c0_i32 = arith.constant 0 : i32
    %c0_i32_0 = arith.constant 0 : i32
    return %arg0, %c0_i32 : i32, i32
  }
  func.func @transform_1(%arg0: i32) -> (i32, i32) {
    %c0_i32 = arith.constant 0 : i32
    %c0_i32_0 = arith.constant 0 : i32
    %c0_i32_1 = arith.constant 0 : i32
    return %c0_i32, %c0_i32_0 : i32, i32
  }
  func.func @transform_2(%arg0: i32) -> (i32, i32) {
    %c0_i32 = arith.constant 0 : i32
    %c0_i32_0 = arith.constant 0 : i32
    return %arg0, %c0_i32 : i32, i32
  }
}

module attributes {stable_mosaic.version = 11 : i64} {
  func.func @_flash_attn_kernel(%arg0: i32, %arg1: i32, %arg2: i32, %arg3: memref<2x8x16xbf16, #tpu.memory_space<vmem>>, %arg4: memref<1x8x16xbf16, #tpu.memory_space<vmem>>, %arg5: memref<1x8x16xbf16, #tpu.memory_space<vmem>>, %arg6: memref<8x8xf32, #tpu.memory_space<vmem>>, %arg7: memref<8x8xf32, #tpu.memory_space<vmem>>, %arg8: memref<8x8xf32, #tpu.memory_space<vmem>>, %arg9: memref<8x8xf32, #tpu.memory_space<vmem>>, %arg10: memref<2x8x16xbf16, #tpu.memory_space<vmem>>, %arg11: memref<2x8x1xf32, #tpu.memory_space<vmem>>, %arg12: memref<2x8x1xf32, #tpu.memory_space<vmem>>, %arg13: memref<2x8x16xf32, #tpu.memory_space<vmem>>) attributes {dimension_semantics = [#tpu.dimension_semantics<parallel>, #tpu.dimension_semantics<parallel>, #tpu.dimension_semantics<arbitrary>], iteration_bounds = array<i64: 2, 1, 1>, scalar_prefetch = 0 : i64, scratch_operands = 3 : i64, tpu.core_type = #tpu.core_type<tc>, window_params = [{transform_indices = @transform_0, window_bounds = array<i64: 2, 8, 16>}, {transform_indices = @transform_1, window_bounds = array<i64: 1, 8, 16>}, {transform_indices = @transform_2, window_bounds = array<i64: 1, 8, 16>}, {transform_indices = @transform_3, window_bounds = array<i64: 8, 8>}, {transform_indices = @transform_4, window_bounds = array<i64: 8, 8>}, {transform_indices = @transform_5, window_bounds = array<i64: 8, 8>}, {transform_indices = @transform_6, window_bounds = array<i64: 8, 8>}, {transform_indices = @transform_7, window_bounds = array<i64: 2, 8, 16>}]} {
    %c0_i32 = arith.constant 0 : i32
    %0 = arith.cmpi eq, %arg2, %c0_i32 : i32
    %1 = arith.extui %0 : i1 to i32
    %c0_i32_0 = arith.constant 0 : i32
    %2 = arith.cmpi ne, %1, %c0_i32_0 : i32
    scf.if %2 {
      %cst = arith.constant 0xFF800000 : f32
      %12 = vector.broadcast %cst : f32 to vector<2x8x1xf32>
      %c0 = arith.constant 0 : index
      %c0_5 = arith.constant 0 : index
      %c0_6 = arith.constant 0 : index
      %13 = vector.load %arg11[%c0, %c0_5, %c0_6] : memref<2x8x1xf32, #tpu.memory_space<vmem>>, vector<2x8x1xf32>
      tpu.vector_store %arg11[%c0, %c0_5, %c0_6], %12 {strides = array<i32>} : memref<2x8x1xf32, #tpu.memory_space<vmem>>, vector<2x8x1xf32>,
      %cst_7 = arith.constant 0.000000e+00 : f32
      %14 = vector.broadcast %cst_7 : f32 to vector<2x8x1xf32>
      %c0_8 = arith.constant 0 : index
      %c0_9 = arith.constant 0 : index
      %c0_10 = arith.constant 0 : index
      %15 = vector.load %arg12[%c0_8, %c0_9, %c0_10] : memref<2x8x1xf32, #tpu.memory_space<vmem>>, vector<2x8x1xf32>
      tpu.vector_store %arg12[%c0_8, %c0_9, %c0_10], %14 {strides = array<i32>} : memref<2x8x1xf32, #tpu.memory_space<vmem>>, vector<2x8x1xf32>,
      %cst_11 = arith.constant 0.000000e+00 : f32
      %16 = vector.broadcast %cst_11 : f32 to vector<2x8x16xf32>
      %c0_12 = arith.constant 0 : index
      %c0_13 = arith.constant 0 : index
      %c0_14 = arith.constant 0 : index
      %17 = vector.load %arg13[%c0_12, %c0_13, %c0_14] : memref<2x8x16xf32, #tpu.memory_space<vmem>>, vector<2x8x16xf32>
      tpu.vector_store %arg13[%c0_12, %c0_13, %c0_14], %16 {strides = array<i32>} : memref<2x8x16xf32, #tpu.memory_space<vmem>>, vector<2x8x16xf32>,
    } else {
    }
    %c8_i32 = arith.constant 8 : i32
    %3 = arith.muli %arg2, %c8_i32 : i32
    %c1_i32 = arith.constant 1 : i32
    %4 = arith.addi %arg1, %c1_i32 : i32
    %c8_i32_1 = arith.constant 8 : i32
    %5 = arith.muli %4, %c8_i32_1 : i32
    %6 = arith.cmpi slt, %3, %5 : i32
    %7 = arith.extui %6 : i1 to i32
    %c0_i32_2 = arith.constant 0 : i32
    %8 = arith.cmpi ne, %7, %c0_i32_2 : i32
    scf.if %8 {
      %c0 = arith.constant 0 : index
      %c0_5 = arith.constant 0 : index
      %c0_6 = arith.constant 0 : index
      %12 = vector.load %arg3[%c0, %c0_5, %c0_6] : memref<2x8x16xbf16, #tpu.memory_space<vmem>>, vector<2x8x16xbf16>
      %13 = arith.extf %12 : vector<2x8x16xbf16> to vector<2x8x16xf32>
      %c0_7 = arith.constant 0 : index
      %c0_8 = arith.constant 0 : index
      %14 = vector.load %arg6[%c0_7, %c0_8] : memref<8x8xf32, #tpu.memory_space<vmem>>, vector<8x8xf32>
      %c0_9 = arith.constant 0 : index
      %c0_10 = arith.constant 0 : index
      %15 = vector.load %arg7[%c0_9, %c0_10] : memref<8x8xf32, #tpu.memory_space<vmem>>, vector<8x8xf32>
      %16 = vector.extract_strided_slice %13 {offsets = [0, 0, 0], sizes = [2, 8, 8], strides = [1, 1, 1]} : vector<2x8x16xf32> to vector<2x8x8xf32>
      %17 = vector.extract_strided_slice %13 {offsets = [0, 0, 8], sizes = [2, 8, 8], strides = [1, 1, 1]} : vector<2x8x16xf32> to vector<2x8x8xf32>
      %18 = vector.shape_cast %14 : vector<8x8xf32> to vector<1x8x8xf32>
      %19 = vector.broadcast %18 : vector<1x8x8xf32> to vector<2x8x8xf32>
      %20 = arith.mulf %16, %19 : vector<2x8x8xf32>
      %21 = vector.shape_cast %15 : vector<8x8xf32> to vector<1x8x8xf32>
      %22 = vector.broadcast %21 : vector<1x8x8xf32> to vector<2x8x8xf32>
      %23 = arith.mulf %17, %22 : vector<2x8x8xf32>
      %24 = arith.subf %20, %23 : vector<2x8x8xf32>
      %25 = vector.shape_cast %14 : vector<8x8xf32> to vector<1x8x8xf32>
      %26 = vector.broadcast %25 : vector<1x8x8xf32> to vector<2x8x8xf32>
      %27 = arith.mulf %17, %26 : vector<2x8x8xf32>
      %28 = vector.shape_cast %15 : vector<8x8xf32> to vector<1x8x8xf32>
      %29 = vector.broadcast %28 : vector<1x8x8xf32> to vector<2x8x8xf32>
      %30 = arith.mulf %16, %29 : vector<2x8x8xf32>
      %31 = arith.addf %27, %30 : vector<2x8x8xf32>
      %32 = tpu.concatenate %24, %31 in 2 : vector<2x8x8xf32>, vector<2x8x8xf32> -> vector<2x8x16xf32>
      %cst = arith.constant 2.500000e-01 : f32
      %33 = vector.broadcast %cst : f32 to vector<2x8x16xf32>
      %34 = arith.mulf %32, %33 : vector<2x8x16xf32>
      %35 = arith.truncf %34 : vector<2x8x16xf32> to vector<2x8x16xbf16>
      %c0_11 = arith.constant 0 : index
      %c0_12 = arith.constant 0 : index
      %c0_13 = arith.constant 0 : index
      %36 = vector.load %arg4[%c0_11, %c0_12, %c0_13] : memref<1x8x16xbf16, #tpu.memory_space<vmem>>, vector<1x8x16xbf16>
      %37 = vector.shape_cast %36 : vector<1x8x16xbf16> to vector<8x16xbf16>
      %38 = arith.extf %37 : vector<8x16xbf16> to vector<8x16xf32>
      %c0_14 = arith.constant 0 : index
      %c0_15 = arith.constant 0 : index
      %39 = vector.load %arg8[%c0_14, %c0_15] : memref<8x8xf32, #tpu.memory_space<vmem>>, vector<8x8xf32>
      %c0_16 = arith.constant 0 : index
      %c0_17 = arith.constant 0 : index
      %40 = vector.load %arg9[%c0_16, %c0_17] : memref<8x8xf32, #tpu.memory_space<vmem>>, vector<8x8xf32>
      %41 = vector.extract_strided_slice %38 {offsets = [0, 0], sizes = [8, 8], strides = [1, 1]} : vector<8x16xf32> to vector<8x8xf32>
      %42 = vector.extract_strided_slice %38 {offsets = [0, 8], sizes = [8, 8], strides = [1, 1]} : vector<8x16xf32> to vector<8x8xf32>
      %43 = arith.mulf %41, %39 : vector<8x8xf32>
      %44 = arith.mulf %42, %40 : vector<8x8xf32>
      %45 = arith.subf %43, %44 : vector<8x8xf32>
      %46 = arith.mulf %42, %39 : vector<8x8xf32>
      %47 = arith.mulf %41, %40 : vector<8x8xf32>
      %48 = arith.addf %46, %47 : vector<8x8xf32>
      %49 = tpu.concatenate %45, %48 in 1 : vector<8x8xf32>, vector<8x8xf32> -> vector<8x16xf32>
      %50 = arith.truncf %49 : vector<8x16xf32> to vector<8x16xbf16>
      %51 = vector.shape_cast %50 : vector<8x16xbf16> to vector<1x8x16xbf16>
      %52 = vector.broadcast %51 : vector<1x8x16xbf16> to vector<2x8x16xbf16>
      "tpu.trace_start"() <{level = 10 : i32, message = "gqd,gkd->gqk"}> : () -> ()
      %cst_18 = arith.constant dense<0.000000e+00> : vector<2x8x8xf32>
      %53 = tpu.matmul %35, %52, %cst_18 {dimension_numbers = #tpu.dot_dimension_numbers<[2], [2], [1], [1], [0, 0, 0, 1, 1, 1], [0], [0]>} : vector<2x8x16xbf16>, vector<2x8x16xbf16>, vector<2x8x8xf32> -> vector<2x8x8xf32>
      "tpu.trace_stop"() : () -> ()
      %c8_i32_19 = arith.constant 8 : i32
      %54 = arith.muli %arg1, %c8_i32_19 : i32
      %55 = tpu.iota {dimensions = array<i32: 1>} : vector<2x8x8xi32>
      %56 = vector.broadcast %54 : i32 to vector<2x8x8xi32>
      %57 = arith.addi %56, %55 : vector<2x8x8xi32>
      %c8_i32_20 = arith.constant 8 : i32
      %58 = arith.muli %arg2, %c8_i32_20 : i32
      %59 = tpu.iota {dimensions = array<i32: 2>} : vector<2x8x8xi32>
      %60 = vector.broadcast %58 : i32 to vector<2x8x8xi32>
      %61 = arith.addi %60, %59 : vector<2x8x8xi32>
      %62 = arith.cmpi sle, %61, %57 : vector<2x8x8xi32>
      %cst_21 = arith.constant 0xFF800000 : f32
      %63 = vector.broadcast %cst_21 : f32 to vector<2x8x8xf32>
      %64 = arith.select %62, %53, %63 : vector<2x8x8xi1>, vector<2x8x8xf32>
      %c0_22 = arith.constant 0 : index
      %c0_23 = arith.constant 0 : index
      %c0_24 = arith.constant 0 : index
      %65 = vector.load %arg11[%c0_22, %c0_23, %c0_24] : memref<2x8x1xf32, #tpu.memory_space<vmem>>, vector<2x8x1xf32>
      %cst_25 = arith.constant dense<0xFF800000> : vector<2x8xf32>
      %66 = vector.multi_reduction <maximumf>, %64, %cst_25 [2] : vector<2x8x8xf32> to vector<2x8xf32>
      %67 = vector.shape_cast %66 : vector<2x8xf32> to vector<2x8x1xf32>
      %68 = arith.maximumf %65, %67 : vector<2x8x1xf32>
      %69 = arith.subf %65, %68 : vector<2x8x1xf32>
      %70 = math.exp %69 : vector<2x8x1xf32>
      %71 = vector.broadcast %68 : vector<2x8x1xf32> to vector<2x8x8xf32>
      %72 = arith.subf %64, %71 : vector<2x8x8xf32>
      %73 = math.exp %72 : vector<2x8x8xf32>
      %c0_26 = arith.constant 0 : index
      %c0_27 = arith.constant 0 : index
      %c0_28 = arith.constant 0 : index
      %74 = vector.load %arg12[%c0_26, %c0_27, %c0_28] : memref<2x8x1xf32, #tpu.memory_space<vmem>>, vector<2x8x1xf32>
      %75 = arith.mulf %70, %74 : vector<2x8x1xf32>
      %cst_29 = arith.constant dense<0.000000e+00> : vector<2x8xf32>
      %76 = vector.multi_reduction <add>, %73, %cst_29 [2] : vector<2x8x8xf32> to vector<2x8xf32>
      %77 = vector.shape_cast %76 : vector<2x8xf32> to vector<2x8x1xf32>
      %78 = arith.addf %75, %77 : vector<2x8x1xf32>
      %c0_30 = arith.constant 0 : index
      %c0_31 = arith.constant 0 : index
      %c0_32 = arith.constant 0 : index
      %79 = vector.load %arg12[%c0_30, %c0_31, %c0_32] : memref<2x8x1xf32, #tpu.memory_space<vmem>>, vector<2x8x1xf32>
      tpu.vector_store %arg12[%c0_30, %c0_31, %c0_32], %78 {strides = array<i32>} : memref<2x8x1xf32, #tpu.memory_space<vmem>>, vector<2x8x1xf32>,
      %c0_33 = arith.constant 0 : index
      %c0_34 = arith.constant 0 : index
      %c0_35 = arith.constant 0 : index
      %80 = vector.load %arg5[%c0_33, %c0_34, %c0_35] : memref<1x8x16xbf16, #tpu.memory_space<vmem>>, vector<1x8x16xbf16>
      %81 = vector.shape_cast %80 : vector<1x8x16xbf16> to vector<8x16xbf16>
      %82 = vector.shape_cast %81 : vector<8x16xbf16> to vector<1x8x16xbf16>
      %83 = vector.broadcast %82 : vector<1x8x16xbf16> to vector<2x8x16xbf16>
      %c0_36 = arith.constant 0 : index
      %c0_37 = arith.constant 0 : index
      %c0_38 = arith.constant 0 : index
      %84 = vector.load %arg13[%c0_36, %c0_37, %c0_38] : memref<2x8x16xf32, #tpu.memory_space<vmem>>, vector<2x8x16xf32>
      %85 = vector.broadcast %70 : vector<2x8x1xf32> to vector<2x8x16xf32>
      %86 = arith.mulf %85, %84 : vector<2x8x16xf32>
      %87 = arith.truncf %73 : vector<2x8x8xf32> to vector<2x8x8xbf16>
      "tpu.trace_start"() <{level = 10 : i32, message = "gqk,gkd->gqd"}> : () -> ()
      %cst_39 = arith.constant dense<0.000000e+00> : vector<2x8x16xf32>
      %88 = tpu.matmul %87, %83, %cst_39 {dimension_numbers = #tpu.dot_dimension_numbers<[2], [1], [1], [2], [0, 0, 0, 1, 1, 2], [0], [0]>} : vector<2x8x8xbf16>, vector<2x8x16xbf16>, vector<2x8x16xf32> -> vector<2x8x16xf32>
      "tpu.trace_stop"() : () -> ()
      %89 = arith.addf %86, %88 : vector<2x8x16xf32>
      %c0_40 = arith.constant 0 : index
      %c0_41 = arith.constant 0 : index
      %c0_42 = arith.constant 0 : index
      %90 = vector.load %arg13[%c0_40, %c0_41, %c0_42] : memref<2x8x16xf32, #tpu.memory_space<vmem>>, vector<2x8x16xf32>
      tpu.vector_store %arg13[%c0_40, %c0_41, %c0_42], %89 {strides = array<i32>} : memref<2x8x16xf32, #tpu.memory_space<vmem>>, vector<2x8x16xf32>,
      %c0_43 = arith.constant 0 : index
      %c0_44 = arith.constant 0 : index
      %c0_45 = arith.constant 0 : index
      %91 = vector.load %arg11[%c0_43, %c0_44, %c0_45] : memref<2x8x1xf32, #tpu.memory_space<vmem>>, vector<2x8x1xf32>
      tpu.vector_store %arg11[%c0_43, %c0_44, %c0_45], %68 {strides = array<i32>} : memref<2x8x1xf32, #tpu.memory_space<vmem>>, vector<2x8x1xf32>,
    } else {
    }
    %c0_i32_3 = arith.constant 0 : i32
    %9 = arith.cmpi eq, %arg2, %c0_i32_3 : i32
    %10 = arith.extui %9 : i1 to i32
    %c0_i32_4 = arith.constant 0 : i32
    %11 = arith.cmpi ne, %10, %c0_i32_4 : i32
    scf.if %11 {
      %c0 = arith.constant 0 : index
      %c0_5 = arith.constant 0 : index
      %c0_6 = arith.constant 0 : index
      %12 = vector.load %arg12[%c0, %c0_5, %c0_6] : memref<2x8x1xf32, #tpu.memory_space<vmem>>, vector<2x8x1xf32>
      %13 = tpu.reciprocal %12 {approx = true} : vector<2x8x1xf32> -> vector<2x8x1xf32>
      %c0_7 = arith.constant 0 : index
      %c0_8 = arith.constant 0 : index
      %c0_9 = arith.constant 0 : index
      %14 = vector.load %arg13[%c0_7, %c0_8, %c0_9] : memref<2x8x16xf32, #tpu.memory_space<vmem>>, vector<2x8x16xf32>
      %15 = vector.broadcast %13 : vector<2x8x1xf32> to vector<2x8x16xf32>
      %16 = arith.mulf %14, %15 : vector<2x8x16xf32>
      %17 = arith.truncf %16 : vector<2x8x16xf32> to vector<2x8x16xbf16>
      %c0_10 = arith.constant 0 : index
      %c0_11 = arith.constant 0 : index
      %c0_12 = arith.constant 0 : index
      %18 = vector.load %arg10[%c0_10, %c0_11, %c0_12] : memref<2x8x16xbf16, #tpu.memory_space<vmem>>, vector<2x8x16xbf16>
      tpu.vector_store %arg10[%c0_10, %c0_11, %c0_12], %17 {strides = array<i32>} : memref<2x8x16xbf16, #tpu.memory_space<vmem>>, vector<2x8x16xbf16>,
    } else {
    }
    return
  }
  func.func @transform_0(%arg0: i32, %arg1: i32, %arg2: i32) -> (i32, i32, i32) {
    %c0_i32 = arith.constant 0 : i32
    %c0_i32_0 = arith.constant 0 : i32
    return %arg0, %arg1, %c0_i32 : i32, i32, i32
  }
  func.func @transform_1(%arg0: i32, %arg1: i32, %arg2: i32) -> (i32, i32, i32) {
    %c0_i32 = arith.constant 0 : i32
    %c0_i32_0 = arith.constant 0 : i32
    return %arg0, %arg2, %c0_i32 : i32, i32, i32
  }
  func.func @transform_2(%arg0: i32, %arg1: i32, %arg2: i32) -> (i32, i32, i32) {
    %c0_i32 = arith.constant 0 : i32
    %c0_i32_0 = arith.constant 0 : i32
    return %arg0, %arg2, %c0_i32 : i32, i32, i32
  }
  func.func @transform_3(%arg0: i32, %arg1: i32, %arg2: i32) -> (i32, i32) {
    %c0_i32 = arith.constant 0 : i32
    %c0_i32_0 = arith.constant 0 : i32
    return %arg1, %c0_i32 : i32, i32
  }
  func.func @transform_4(%arg0: i32, %arg1: i32, %arg2: i32) -> (i32, i32) {
    %c0_i32 = arith.constant 0 : i32
    %c0_i32_0 = arith.constant 0 : i32
    return %arg1, %c0_i32 : i32, i32
  }
  func.func @transform_5(%arg0: i32, %arg1: i32, %arg2: i32) -> (i32, i32) {
    %c0_i32 = arith.constant 0 : i32
    %c0_i32_0 = arith.constant 0 : i32
    return %arg2, %c0_i32 : i32, i32
  }
  func.func @transform_6(%arg0: i32, %arg1: i32, %arg2: i32) -> (i32, i32) {
    %c0_i32 = arith.constant 0 : i32
    %c0_i32_0 = arith.constant 0 : i32
    return %arg2, %c0_i32 : i32, i32
  }
  func.func @transform_7(%arg0: i32, %arg1: i32, %arg2: i32) -> (i32, i32, i32) {
    %c0_i32 = arith.constant 0 : i32
    %c0_i32_0 = arith.constant 0 : i32
    return %arg0, %arg1, %c0_i32 : i32, i32, i32
  }
}

module attributes {stable_mosaic.version = 11 : i64} {
  func.func @_matmul_kernel(%arg0: i32, %arg1: i32, %arg2: i32, %arg3: memref<8x64xbf16, #tpu.memory_space<vmem>>, %arg4: memref<64x64xbf16, #tpu.memory_space<vmem>>, %arg5: memref<8x64xbf16, #tpu.memory_space<vmem>>, %arg6: memref<8x64xf32, #tpu.memory_space<vmem>>) attributes {dimension_semantics = [#tpu.dimension_semantics<parallel>, #tpu.dimension_semantics<parallel>, #tpu.dimension_semantics<arbitrary>], iteration_bounds = array<i64: 1, 1, 1>, scalar_prefetch = 0 : i64, scratch_operands = 1 : i64, tpu.core_type = #tpu.core_type<tc>, window_params = [{transform_indices = @transform_0, window_bounds = array<i64: 8, 64>}, {transform_indices = @transform_1, window_bounds = array<i64: 64, 64>}, {transform_indices = @transform_2, window_bounds = array<i64: 8, 64>}]} {
    %c0_i32 = arith.constant 0 : i32
    %0 = arith.cmpi eq, %arg2, %c0_i32 : i32
    %1 = arith.extui %0 : i1 to i32
    %c0_i32_0 = arith.constant 0 : i32
    %2 = arith.cmpi ne, %1, %c0_i32_0 : i32
    scf.if %2 {
      %cst_10 = arith.constant 0.000000e+00 : f32
      %12 = vector.broadcast %cst_10 : f32 to vector<8x64xf32>
      %c0_11 = arith.constant 0 : index
      %c0_12 = arith.constant 0 : index
      %13 = vector.load %arg6[%c0_11, %c0_12] : memref<8x64xf32, #tpu.memory_space<vmem>>, vector<8x64xf32>
      tpu.vector_store %arg6[%c0_11, %c0_12], %12 {strides = array<i32>} : memref<8x64xf32, #tpu.memory_space<vmem>>, vector<8x64xf32>,
    } else {
    }
    %c0 = arith.constant 0 : index
    %c0_1 = arith.constant 0 : index
    %3 = vector.load %arg6[%c0, %c0_1] : memref<8x64xf32, #tpu.memory_space<vmem>>, vector<8x64xf32>
    %c0_2 = arith.constant 0 : index
    %c0_3 = arith.constant 0 : index
    %4 = vector.load %arg3[%c0_2, %c0_3] : memref<8x64xbf16, #tpu.memory_space<vmem>>, vector<8x64xbf16>
    %c0_4 = arith.constant 0 : index
    %c0_5 = arith.constant 0 : index
    %5 = vector.load %arg4[%c0_4, %c0_5] : memref<64x64xbf16, #tpu.memory_space<vmem>>, vector<64x64xbf16>
    %cst = arith.constant dense<0.000000e+00> : vector<8x64xf32>
    %6 = tpu.matmul %4, %5, %cst {dimension_numbers = #tpu.dot_dimension_numbers<[1], [0], [0], [1], [0, 0, 1, 1], [], []>} : vector<8x64xbf16>, vector<64x64xbf16>, vector<8x64xf32> -> vector<8x64xf32>
    %7 = arith.addf %3, %6 : vector<8x64xf32>
    %c0_6 = arith.constant 0 : index
    %c0_7 = arith.constant 0 : index
    %8 = vector.load %arg6[%c0_6, %c0_7] : memref<8x64xf32, #tpu.memory_space<vmem>>, vector<8x64xf32>
    tpu.vector_store %arg6[%c0_6, %c0_7], %7 {strides = array<i32>} : memref<8x64xf32, #tpu.memory_space<vmem>>, vector<8x64xf32>,
    %c0_i32_8 = arith.constant 0 : i32
    %9 = arith.cmpi eq, %arg2, %c0_i32_8 : i32
    %10 = arith.extui %9 : i1 to i32
    %c0_i32_9 = arith.constant 0 : i32
    %11 = arith.cmpi ne, %10, %c0_i32_9 : i32
    scf.if %11 {
      %c0_10 = arith.constant 0 : index
      %c0_11 = arith.constant 0 : index
      %12 = vector.load %arg6[%c0_10, %c0_11] : memref<8x64xf32, #tpu.memory_space<vmem>>, vector<8x64xf32>
      %13 = arith.truncf %12 : vector<8x64xf32> to vector<8x64xbf16>
      %c0_12 = arith.constant 0 : index
      %c0_13 = arith.constant 0 : index
      %14 = vector.load %arg5[%c0_12, %c0_13] : memref<8x64xbf16, #tpu.memory_space<vmem>>, vector<8x64xbf16>
      tpu.vector_store %arg5[%c0_12, %c0_13], %13 {strides = array<i32>} : memref<8x64xbf16, #tpu.memory_space<vmem>>, vector<8x64xbf16>,
    } else {
    }
    return
  }
  func.func @transform_0(%arg0: i32, %arg1: i32, %arg2: i32) -> (i32, i32) {
    %c0_i32 = arith.constant 0 : i32
    return %arg0, %arg2 : i32, i32
  }
  func.func @transform_1(%arg0: i32, %arg1: i32, %arg2: i32) -> (i32, i32) {
    %c0_i32 = arith.constant 0 : i32
    return %arg2, %arg1 : i32, i32
  }
  func.func @transform_2(%arg0: i32, %arg1: i32, %arg2: i32) -> (i32, i32) {
    %c0_i32 = arith.constant 0 : i32
    return %arg0, %arg1 : i32, i32
  }
}

module attributes {stable_mosaic.version = 11 : i64} {
  func.func @_rmsnorm_add_kernel(%arg0: i32, %arg1: memref<8x64xbf16, #tpu.memory_space<vmem>>, %arg2: memref<8x64xbf16, #tpu.memory_space<vmem>>, %arg3: memref<1x64xbf16, #tpu.memory_space<vmem>>, %arg4: memref<8x64xbf16, #tpu.memory_space<vmem>>, %arg5: memref<8x64xbf16, #tpu.memory_space<vmem>>) attributes {dimension_semantics = [#tpu.dimension_semantics<parallel>], iteration_bounds = array<i64: 1>, scalar_prefetch = 0 : i64, scratch_operands = 0 : i64, tpu.core_type = #tpu.core_type<tc>, window_params = [{transform_indices = @transform_0, window_bounds = array<i64: 8, 64>}, {transform_indices = @transform_1, window_bounds = array<i64: 8, 64>}, {pipeline_mode = #tpu.pipeline_mode<synchronous>, transform_indices = @transform_2, window_bounds = array<i64: 1, 64>}, {transform_indices = @transform_3, window_bounds = array<i64: 8, 64>}, {transform_indices = @transform_4, window_bounds = array<i64: 8, 64>}]} {
    %c0 = arith.constant 0 : index
    %c0_0 = arith.constant 0 : index
    %0 = vector.load %arg1[%c0, %c0_0] : memref<8x64xbf16, #tpu.memory_space<vmem>>, vector<8x64xbf16>
    %1 = arith.extf %0 : vector<8x64xbf16> to vector<8x64xf32>
    %c0_1 = arith.constant 0 : index
    %c0_2 = arith.constant 0 : index
    %2 = vector.load %arg2[%c0_1, %c0_2] : memref<8x64xbf16, #tpu.memory_space<vmem>>, vector<8x64xbf16>
    %3 = arith.extf %2 : vector<8x64xbf16> to vector<8x64xf32>
    %4 = arith.addf %1, %3 : vector<8x64xf32>
    %5 = arith.truncf %4 : vector<8x64xf32> to vector<8x64xbf16>
    %c0_3 = arith.constant 0 : index
    %c0_4 = arith.constant 0 : index
    %6 = vector.load %arg5[%c0_3, %c0_4] : memref<8x64xbf16, #tpu.memory_space<vmem>>, vector<8x64xbf16>
    tpu.vector_store %arg5[%c0_3, %c0_4], %5 {strides = array<i32>} : memref<8x64xbf16, #tpu.memory_space<vmem>>, vector<8x64xbf16>,
    %7 = arith.mulf %4, %4 : vector<8x64xf32>
    %cst = arith.constant dense<0.000000e+00> : vector<8xf32>
    %8 = vector.multi_reduction <add>, %7, %cst [1] : vector<8x64xf32> to vector<8xf32>
    %9 = vector.shape_cast %8 : vector<8xf32> to vector<8x1xf32>
    %cst_5 = arith.constant 6.400000e+01 : f32
    %10 = vector.broadcast %cst_5 : f32 to vector<8x1xf32>
    %11 = arith.divf %9, %10 : vector<8x1xf32>
    %cst_6 = arith.constant 9.99999974E-6 : f32
    %12 = vector.broadcast %cst_6 : f32 to vector<8x1xf32>
    %13 = arith.addf %11, %12 : vector<8x1xf32>
    %14 = math.rsqrt %13 : vector<8x1xf32>
    %15 = vector.broadcast %14 : vector<8x1xf32> to vector<8x64xf32>
    %16 = arith.mulf %4, %15 : vector<8x64xf32>
    %c0_7 = arith.constant 0 : index
    %c0_8 = arith.constant 0 : index
    %17 = vector.load %arg3[%c0_7, %c0_8] : memref<1x64xbf16, #tpu.memory_space<vmem>>, vector<1x64xbf16>
    %18 = arith.extf %17 : vector<1x64xbf16> to vector<1x64xf32>
    %19 = vector.broadcast %18 : vector<1x64xf32> to vector<8x64xf32>
    %20 = arith.mulf %16, %19 : vector<8x64xf32>
    %21 = arith.truncf %20 : vector<8x64xf32> to vector<8x64xbf16>
    %c0_9 = arith.constant 0 : index
    %c0_10 = arith.constant 0 : index
    %22 = vector.load %arg4[%c0_9, %c0_10] : memref<8x64xbf16, #tpu.memory_space<vmem>>, vector<8x64xbf16>
    tpu.vector_store %arg4[%c0_9, %c0_10], %21 {strides = array<i32>} : memref<8x64xbf16, #tpu.memory_space<vmem>>, vector<8x64xbf16>,
    return
  }
  func.func @transform_0(%arg0: i32) -> (i32, i32) {
    %c0_i32 = arith.constant 0 : i32
    %c0_i32_0 = arith.constant 0 : i32
    return %arg0, %c0_i32 : i32, i32
  }
  func.func @transform_1(%arg0: i32) -> (i32, i32) {
    %c0_i32 = arith.constant 0 : i32
    %c0_i32_0 = arith.constant 0 : i32
    return %arg0, %c0_i32 : i32, i32
  }
  func.func @transform_2(%arg0: i32) -> (i32, i32) {
    %c0_i32 = arith.constant 0 : i32
    %c0_i32_0 = arith.constant 0 : i32
    %c0_i32_1 = arith.constant 0 : i32
    return %c0_i32, %c0_i32_0 : i32, i32
  }
  func.func @transform_3(%arg0: i32) -> (i32, i32) {
    %c0_i32 = arith.constant 0 : i32
    %c0_i32_0 = arith.constant 0 : i32
    return %arg0, %c0_i32 : i32, i32
  }
  func.func @transform_4(%arg0: i32) -> (i32, i32) {
    %c0_i32 = arith.constant 0 : i32
    %c0_i32_0 = arith.constant 0 : i32
    return %arg0, %c0_i32 : i32, i32
  }
}

module attributes {stable_mosaic.version = 11 : i64} {
  func.func @_matmul_kernel(%arg0: i32, %arg1: i32, %arg2: i32, %arg3: memref<8x64xbf16, #tpu.memory_space<vmem>>, %arg4: memref<64x256xbf16, #tpu.memory_space<vmem>>, %arg5: memref<8x256xbf16, #tpu.memory_space<vmem>>, %arg6: memref<8x256xf32, #tpu.memory_space<vmem>>) attributes {dimension_semantics = [#tpu.dimension_semantics<parallel>, #tpu.dimension_semantics<parallel>, #tpu.dimension_semantics<arbitrary>], iteration_bounds = array<i64: 1, 1, 1>, scalar_prefetch = 0 : i64, scratch_operands = 1 : i64, tpu.core_type = #tpu.core_type<tc>, window_params = [{transform_indices = @transform_0, window_bounds = array<i64: 8, 64>}, {transform_indices = @transform_1, window_bounds = array<i64: 64, 256>}, {transform_indices = @transform_2, window_bounds = array<i64: 8, 256>}]} {
    %c0_i32 = arith.constant 0 : i32
    %0 = arith.cmpi eq, %arg2, %c0_i32 : i32
    %1 = arith.extui %0 : i1 to i32
    %c0_i32_0 = arith.constant 0 : i32
    %2 = arith.cmpi ne, %1, %c0_i32_0 : i32
    scf.if %2 {
      %cst_10 = arith.constant 0.000000e+00 : f32
      %12 = vector.broadcast %cst_10 : f32 to vector<8x256xf32>
      %c0_11 = arith.constant 0 : index
      %c0_12 = arith.constant 0 : index
      %13 = vector.load %arg6[%c0_11, %c0_12] : memref<8x256xf32, #tpu.memory_space<vmem>>, vector<8x256xf32>
      tpu.vector_store %arg6[%c0_11, %c0_12], %12 {strides = array<i32>} : memref<8x256xf32, #tpu.memory_space<vmem>>, vector<8x256xf32>,
    } else {
    }
    %c0 = arith.constant 0 : index
    %c0_1 = arith.constant 0 : index
    %3 = vector.load %arg6[%c0, %c0_1] : memref<8x256xf32, #tpu.memory_space<vmem>>, vector<8x256xf32>
    %c0_2 = arith.constant 0 : index
    %c0_3 = arith.constant 0 : index
    %4 = vector.load %arg3[%c0_2, %c0_3] : memref<8x64xbf16, #tpu.memory_space<vmem>>, vector<8x64xbf16>
    %c0_4 = arith.constant 0 : index
    %c0_5 = arith.constant 0 : index
    %5 = vector.load %arg4[%c0_4, %c0_5] : memref<64x256xbf16, #tpu.memory_space<vmem>>, vector<64x256xbf16>
    %cst = arith.constant dense<0.000000e+00> : vector<8x256xf32>
    %6 = tpu.matmul %4, %5, %cst {dimension_numbers = #tpu.dot_dimension_numbers<[1], [0], [0], [1], [0, 0, 1, 1], [], []>} : vector<8x64xbf16>, vector<64x256xbf16>, vector<8x256xf32> -> vector<8x256xf32>
    %7 = arith.addf %3, %6 : vector<8x256xf32>
    %c0_6 = arith.constant 0 : index
    %c0_7 = arith.constant 0 : index
    %8 = vector.load %arg6[%c0_6, %c0_7] : memref<8x256xf32, #tpu.memory_space<vmem>>, vector<8x256xf32>
    tpu.vector_store %arg6[%c0_6, %c0_7], %7 {strides = array<i32>} : memref<8x256xf32, #tpu.memory_space<vmem>>, vector<8x256xf32>,
    %c0_i32_8 = arith.constant 0 : i32
    %9 = arith.cmpi eq, %arg2, %c0_i32_8 : i32
    %10 = arith.extui %9 : i1 to i32
    %c0_i32_9 = arith.constant 0 : i32
    %11 = arith.cmpi ne, %10, %c0_i32_9 : i32
    scf.if %11 {
      %c0_10 = arith.constant 0 : index
      %c0_11 = arith.constant 0 : index
      %12 = vector.load %arg6[%c0_10, %c0_11] : memref<8x256xf32, #tpu.memory_space<vmem>>, vector<8x256xf32>
      %13 = arith.truncf %12 : vector<8x256xf32> to vector<8x256xbf16>
      %c0_12 = arith.constant 0 : index
      %c0_13 = arith.constant 0 : index
      %14 = vector.load %arg5[%c0_12, %c0_13] : memref<8x256xbf16, #tpu.memory_space<vmem>>, vector<8x256xbf16>
      tpu.vector_store %arg5[%c0_12, %c0_13], %13 {strides = array<i32>} : memref<8x256xbf16, #tpu.memory_space<vmem>>, vector<8x256xbf16>,
    } else {
    }
    return
  }
  func.func @transform_0(%arg0: i32, %arg1: i32, %arg2: i32) -> (i32, i32) {
    %c0_i32 = arith.constant 0 : i32
    return %arg0, %arg2 : i32, i32
  }
  func.func @transform_1(%arg0: i32, %arg1: i32, %arg2: i32) -> (i32, i32) {
    %c0_i32 = arith.constant 0 : i32
    return %arg2, %arg1 : i32, i32
  }
  func.func @transform_2(%arg0: i32, %arg1: i32, %arg2: i32) -> (i32, i32) {
    %c0_i32 = arith.constant 0 : i32
    return %arg0, %arg1 : i32, i32
  }
}

module attributes {stable_mosaic.version = 11 : i64} {
  func.func @_silu_down_kernel(%arg0: i32, %arg1: i32, %arg2: i32, %arg3: memref<8x128xbf16, #tpu.memory_space<vmem>>, %arg4: memref<8x128xbf16, #tpu.memory_space<vmem>>, %arg5: memref<128x64xbf16, #tpu.memory_space<vmem>>, %arg6: memref<8x64xbf16, #tpu.memory_space<vmem>>, %arg7: memref<8x64xf32, #tpu.memory_space<vmem>>) attributes {dimension_semantics = [#tpu.dimension_semantics<parallel>, #tpu.dimension_semantics<parallel>, #tpu.dimension_semantics<arbitrary>], iteration_bounds = array<i64: 1, 1, 1>, scalar_prefetch = 0 : i64, scratch_operands = 1 : i64, tpu.core_type = #tpu.core_type<tc>, window_params = [{transform_indices = @transform_0, window_bounds = array<i64: 8, 128>}, {transform_indices = @transform_1, window_bounds = array<i64: 8, 128>}, {transform_indices = @transform_2, window_bounds = array<i64: 128, 64>}, {transform_indices = @transform_3, window_bounds = array<i64: 8, 64>}]} {
    %c0_i32 = arith.constant 0 : i32
    %0 = arith.cmpi eq, %arg2, %c0_i32 : i32
    %1 = arith.extui %0 : i1 to i32
    %c0_i32_0 = arith.constant 0 : i32
    %2 = arith.cmpi ne, %1, %c0_i32_0 : i32
    scf.if %2 {
      %cst_13 = arith.constant 0.000000e+00 : f32
      %23 = vector.broadcast %cst_13 : f32 to vector<8x64xf32>
      %c0_14 = arith.constant 0 : index
      %c0_15 = arith.constant 0 : index
      %24 = vector.load %arg7[%c0_14, %c0_15] : memref<8x64xf32, #tpu.memory_space<vmem>>, vector<8x64xf32>
      tpu.vector_store %arg7[%c0_14, %c0_15], %23 {strides = array<i32>} : memref<8x64xf32, #tpu.memory_space<vmem>>, vector<8x64xf32>,
    } else {
    }
    %c0 = arith.constant 0 : index
    %c0_1 = arith.constant 0 : index
    %3 = vector.load %arg3[%c0, %c0_1] : memref<8x128xbf16, #tpu.memory_space<vmem>>, vector<8x128xbf16>
    %4 = arith.extf %3 : vector<8x128xbf16> to vector<8x128xf32>
    %c0_2 = arith.constant 0 : index
    %c0_3 = arith.constant 0 : index
    %5 = vector.load %arg4[%c0_2, %c0_3] : memref<8x128xbf16, #tpu.memory_space<vmem>>, vector<8x128xbf16>
    %6 = arith.extf %5 : vector<8x128xbf16> to vector<8x128xf32>
    %7 = arith.negf %4 : vector<8x128xf32>
    %8 = math.exp %7 : vector<8x128xf32>
    %cst = arith.constant 1.000000e+00 : f32
    %9 = vector.broadcast %cst : f32 to vector<8x128xf32>
    %10 = arith.addf %9, %8 : vector<8x128xf32>
    %11 = arith.divf %9, %10 : vector<8x128xf32>
    %12 = arith.mulf %4, %11 : vector<8x128xf32>
    %13 = arith.mulf %12, %6 : vector<8x128xf32>
    %14 = arith.truncf %13 : vector<8x128xf32> to vector<8x128xbf16>
    %c0_4 = arith.constant 0 : index
    %c0_5 = arith.constant 0 : index
    %15 = vector.load %arg7[%c0_4, %c0_5] : memref<8x64xf32, #tpu.memory_space<vmem>>, vector<8x64xf32>
    %c0_6 = arith.constant 0 : index
    %c0_7 = arith.constant 0 : index
    %16 = vector.load %arg5[%c0_6, %c0_7] : memref<128x64xbf16, #tpu.memory_space<vmem>>, vector<128x64xbf16>
    %cst_8 = arith.constant dense<0.000000e+00> : vector<8x64xf32>
    %17 = tpu.matmul %14, %16, %cst_8 {dimension_numbers = #tpu.dot_dimension_numbers<[1], [0], [0], [1], [0, 0, 1, 1], [], []>} : vector<8x128xbf16>, vector<128x64xbf16>, vector<8x64xf32> -> vector<8x64xf32>
    %18 = arith.addf %15, %17 : vector<8x64xf32>
    %c0_9 = arith.constant 0 : index
    %c0_10 = arith.constant 0 : index
    %19 = vector.load %arg7[%c0_9, %c0_10] : memref<8x64xf32, #tpu.memory_space<vmem>>, vector<8x64xf32>
    tpu.vector_store %arg7[%c0_9, %c0_10], %18 {strides = array<i32>} : memref<8x64xf32, #tpu.memory_space<vmem>>, vector<8x64xf32>,
    %c0_i32_11 = arith.constant 0 : i32
    %20 = arith.cmpi eq, %arg2, %c0_i32_11 : i32
    %21 = arith.extui %20 : i1 to i32
    %c0_i32_12 = arith.constant 0 : i32
    %22 = arith.cmpi ne, %21, %c0_i32_12 : i32
    scf.if %22 {
      %c0_13 = arith.constant 0 : index
      %c0_14 = arith.constant 0 : index
      %23 = vector.load %arg7[%c0_13, %c0_14] : memref<8x64xf32, #tpu.memory_space<vmem>>, vector<8x64xf32>
      %24 = arith.truncf %23 : vector<8x64xf32> to vector<8x64xbf16>
      %c0_15 = arith.constant 0 : index
      %c0_16 = arith.constant 0 : index
      %25 = vector.load %arg6[%c0_15, %c0_16] : memref<8x64xbf16, #tpu.memory_space<vmem>>, vector<8x64xbf16>
      tpu.vector_store %arg6[%c0_15, %c0_16], %24 {strides = array<i32>} : memref<8x64xbf16, #tpu.memory_space<vmem>>, vector<8x64xbf16>,
    } else {
    }
    return
  }
  func.func @transform_0(%arg0: i32, %arg1: i32, %arg2: i32) -> (i32, i32) {
    %c0_i32 = arith.constant 0 : i32
    return %arg0, %arg2 : i32, i32
  }
  func.func @transform_1(%arg0: i32, %arg1: i32, %arg2: i32) -> (i32, i32) {
    %c1_i32 = arith.constant 1 : i32
    %0 = arith.addi %arg2, %c1_i32 : i32
    %c0_i32 = arith.constant 0 : i32
    return %arg0, %0 : i32, i32
  }
  func.func @transform_2(%arg0: i32, %arg1: i32, %arg2: i32) -> (i32, i32) {
    %c0_i32 = arith.constant 0 : i32
    return %arg2, %arg1 : i32, i32
  }
  func.func @transform_3(%arg0: i32, %arg1: i32, %arg2: i32) -> (i32, i32) {
    %c0_i32 = arith.constant 0 : i32
    return %arg0, %arg1 : i32, i32
  }
}

module attributes {stable_mosaic.version = 11 : i64} {
  func.func @_rmsnorm_add_kernel(%arg0: i32, %arg1: memref<8x64xbf16, #tpu.memory_space<vmem>>, %arg2: memref<8x64xbf16, #tpu.memory_space<vmem>>, %arg3: memref<1x64xbf16, #tpu.memory_space<vmem>>, %arg4: memref<8x64xbf16, #tpu.memory_space<vmem>>, %arg5: memref<8x64xbf16, #tpu.memory_space<vmem>>) attributes {dimension_semantics = [#tpu.dimension_semantics<parallel>], iteration_bounds = array<i64: 1>, scalar_prefetch = 0 : i64, scratch_operands = 0 : i64, tpu.core_type = #tpu.core_type<tc>, window_params = [{transform_indices = @transform_0, window_bounds = array<i64: 8, 64>}, {transform_indices = @transform_1, window_bounds = array<i64: 8, 64>}, {pipeline_mode = #tpu.pipeline_mode<synchronous>, transform_indices = @transform_2, window_bounds = array<i64: 1, 64>}, {transform_indices = @transform_3, window_bounds = array<i64: 8, 64>}, {transform_indices = @transform_4, window_bounds = array<i64: 8, 64>}]} {
    %c0 = arith.constant 0 : index
    %c0_0 = arith.constant 0 : index
    %0 = vector.load %arg1[%c0, %c0_0] : memref<8x64xbf16, #tpu.memory_space<vmem>>, vector<8x64xbf16>
    %1 = arith.extf %0 : vector<8x64xbf16> to vector<8x64xf32>
    %c0_1 = arith.constant 0 : index
    %c0_2 = arith.constant 0 : index
    %2 = vector.load %arg2[%c0_1, %c0_2] : memref<8x64xbf16, #tpu.memory_space<vmem>>, vector<8x64xbf16>
    %3 = arith.extf %2 : vector<8x64xbf16> to vector<8x64xf32>
    %4 = arith.addf %1, %3 : vector<8x64xf32>
    %5 = arith.truncf %4 : vector<8x64xf32> to vector<8x64xbf16>
    %c0_3 = arith.constant 0 : index
    %c0_4 = arith.constant 0 : index
    %6 = vector.load %arg5[%c0_3, %c0_4] : memref<8x64xbf16, #tpu.memory_space<vmem>>, vector<8x64xbf16>
    tpu.vector_store %arg5[%c0_3, %c0_4], %5 {strides = array<i32>} : memref<8x64xbf16, #tpu.memory_space<vmem>>, vector<8x64xbf16>,
    %7 = arith.mulf %4, %4 : vector<8x64xf32>
    %cst = arith.constant dense<0.000000e+00> : vector<8xf32>
    %8 = vector.multi_reduction <add>, %7, %cst [1] : vector<8x64xf32> to vector<8xf32>
    %9 = vector.shape_cast %8 : vector<8xf32> to vector<8x1xf32>
    %cst_5 = arith.constant 6.400000e+01 : f32
    %10 = vector.broadcast %cst_5 : f32 to vector<8x1xf32>
    %11 = arith.divf %9, %10 : vector<8x1xf32>
    %cst_6 = arith.constant 9.99999974E-6 : f32
    %12 = vector.broadcast %cst_6 : f32 to vector<8x1xf32>
    %13 = arith.addf %11, %12 : vector<8x1xf32>
    %14 = math.rsqrt %13 : vector<8x1xf32>
    %15 = vector.broadcast %14 : vector<8x1xf32> to vector<8x64xf32>
    %16 = arith.mulf %4, %15 : vector<8x64xf32>
    %c0_7 = arith.constant 0 : index
    %c0_8 = arith.constant 0 : index
    %17 = vector.load %arg3[%c0_7, %c0_8] : memref<1x64xbf16, #tpu.memory_space<vmem>>, vector<1x64xbf16>
    %18 = arith.extf %17 : vector<1x64xbf16> to vector<1x64xf32>
    %19 = vector.broadcast %18 : vector<1x64xf32> to vector<8x64xf32>
    %20 = arith.mulf %16, %19 : vector<8x64xf32>
    %21 = arith.truncf %20 : vector<8x64xf32> to vector<8x64xbf16>
    %c0_9 = arith.constant 0 : index
    %c0_10 = arith.constant 0 : index
    %22 = vector.load %arg4[%c0_9, %c0_10] : memref<8x64xbf16, #tpu.memory_space<vmem>>, vector<8x64xbf16>
    tpu.vector_store %arg4[%c0_9, %c0_10], %21 {strides = array<i32>} : memref<8x64xbf16, #tpu.memory_space<vmem>>, vector<8x64xbf16>,
    return
  }
  func.func @transform_0(%arg0: i32) -> (i32, i32) {
    %c0_i32 = arith.constant 0 : i32
    %c0_i32_0 = arith.constant 0 : i32
    return %arg0, %c0_i32 : i32, i32
  }
  func.func @transform_1(%arg0: i32) -> (i32, i32) {
    %c0_i32 = arith.constant 0 : i32
    %c0_i32_0 = arith.constant 0 : i32
    return %arg0, %c0_i32 : i32, i32
  }
  func.func @transform_2(%arg0: i32) -> (i32, i32) {
    %c0_i32 = arith.constant 0 : i32
    %c0_i32_0 = arith.constant 0 : i32
    %c0_i32_1 = arith.constant 0 : i32
    return %c0_i32, %c0_i32_0 : i32, i32
  }
  func.func @transform_3(%arg0: i32) -> (i32, i32) {
    %c0_i32 = arith.constant 0 : i32
    %c0_i32_0 = arith.constant 0 : i32
    return %arg0, %c0_i32 : i32, i32
  }
  func.func @transform_4(%arg0: i32) -> (i32, i32) {
    %c0_i32 = arith.constant 0 : i32
    %c0_i32_0 = arith.constant 0 : i32
    return %arg0, %c0_i32 : i32, i32
  }
}

</mosaic_0001>

<bundles_post_ra>
// kernel: _lambda_.16
= control target key start
LH: loop header
LB: loop body
LE: loop exit
PB: predicated region body
PF: predicated region fallthrough
CT: control target
= control target key end

     0   :  { %v135_v0 = vmov 0.0   ;;  %vm136_vm0 = vmmov 0   ;;  %vm51_vm1 = vcmask 523264   ;;  %s170_s1 = inlined_call_operand.vmem [shape: bf16[64,128], index: 1, kind: input, shape index: {}]   ;;  %s171_s0 = inlined_call_operand.vmem [shape: bf16[8,64], index: 0, kind: input, shape index: {}]   ;;  %s172_s2 = inlined_call_operand.vmem [shape: bf16[8,128], index: 2, kind: output, shape index: {}]  }
   0x1   :  { %117 = vmatprep.subr.bf16.mxu0 %v135_v0  ;;  %v131_v1 = vld [vmem:[%s170_s1 + $0x18] sm:$0xff]   ;;  %125 = vmatprep.mubr.msk.bf16.mxu0 %vm136_vm0, %v135_v0  ;;  %v132_v2 = vld [vmem:[%s170_s1 + $0x10] sm:$0xff]   ;;  %v133_v3 = vld [vmem:[%s170_s1 + $0x8] sm:$0xff]  }
   0x2   :  { %118 = vmatpush3.bf16.msra.mxu0 %v131_v1  ;;  %v134_v4 = vld [vmem:[%s170_s1] sm:$0xff]  }
   0x3   :  { %119 = vmatprep.subr.bf16.mxu0 %v135_v0  ;;  %v18_v5 = vld [vmem:[%s171_s0] sm:$0xf] }
   0x6   :  { %120 = vmatpush3.bf16.msra.mxu0 %v132_v2 }
   0x7   :  { %121 = vmatprep.subr.bf16.mxu0 %v135_v0 }
   0xa   :  { %122 = vmatpush3.bf16.msra.mxu0 %v133_v3 }
   0xb   :  { %123 = vmatprep.subr.bf16.mxu0 %v135_v0 }
   0xe   :  { %124 = vmatpush3.bf16.msra.mxu0 %v134_v4 }
  0x11   :  { %126 = vmatmul.mubr.msk.bf16.vlgmr.msra.gmra.mxu0 %vm51_vm1, %v18_v5 }
  0xd1   :  { %v89_v6 = vpop.f32.mrf.mxu0 }
  0xd2   :  { %v101_v7 = vpack.c.bf16 %v89_v6, %v89_v6 }
  0xd3   :  { %v127_v8 = vpop.f32.mrf.mxu0 }
  0xd4   :  { %102 = vst [vmem:[%s172_s2] sm:$0xf] %v101_v7 }
  0xd5   :  { %v92_v9 = vpop.f32.mrf.mxu0 }
  0xd7   :  { %v128_v10 = vpop.f32.mrf.mxu0 }

// kernel: _lambda_.15
= control target key start
LH: loop header
LB: loop body
LE: loop exit
PB: predicated region body
PF: predicated region fallthrough
CT: control target
= control target key end

     0   :  { %vm14_vm0 = vcmask 523264   ;;  %v25_v7 = vlaneseq  ;;  %vm31_vm1 = vcmask 519168   ;;  %s63_s0 = inlined_call_operand.vmem [shape: bf16[8,64], index: 0, kind: input, shape index: {}]   ;;  %s64_s1 = inlined_call_operand.vmem [shape: bf16[1,64], index: 1, kind: input, shape index: {}]   ;;  %s65_s2 = inlined_call_operand.vmem [shape: bf16[8,64], index: 2, kind: output, shape index: {}]  }
   0x1   :  { %v11_v0 = vld [vmem:[%s63_s0] sm:$0xf] }
   0x2   :  { %v12_v1 = vunpack.c.l.bf16 %v11_v0  ;;  %v26_v8 = vshrl.u32 %v25_v7, 7  ;;  %v23_v9 = vld [vmem:[%s64_s1] sm:$0x1] }
   0x3   :  { %v24_v10 = vunpack.c.l.bf16 %v23_v9 }
   0x4   :  { %v13_v2 = vmul.f32 %v12_v1, %v12_v1  ;;  %v27_v11 = vsub.s32 0, %v26_v8 }
   0x6   :  { %v15_v3 = vsel %vm14_vm0, %v13_v2, 0.0  ;;  %v28_v12 = vrot.slane %v24_v10, %v27_v11 }
   0x7   :  { %16 = vadd.xlane.f32.xlu0 %v15_v3 }
  0x90   :  { %v17_v4 = vpop.xlane.xlu0 %16 }
  0x91   :  { %v19_v5 = vmul.f32 0.015625, %v17_v4 }
  0x93   :  { %v20_v6 = vadd.f32 1e-05, %v19_v5 }
  0x95   :  { %37 = vrsqrt.f32 %v20_v6 }
  0xa2   :  { %v38_v13 = vpop.eup %37 }
  0xa3   :  { %v22_v14 = vmul.f32 %v38_v13, %v12_v1 }
  0xa5   :  { %v29_v15 = vmul.f32 %v28_v12, %v22_v14 }
  0xa7   :  { %v30_v16 = vpack.c.bf16 %v29_v15, %v29_v15 }
  0xa9   :  { %32 = vst.msk [vmem:[%s65_s2] sm:$0xf] %vm31_vm1, %v30_v16 }

// kernel: _lambda_.18
= control target key start
LH: loop header
LB: loop body
LE: loop exit
PB: predicated region body
PF: predicated region fallthrough
CT: control target
= control target key end

     0   :  { %vm16_vm0 = vcmask 523264   ;;  %v137_v0 = vmov 0.0   ;;  %vm138_vm1 = vmmov 0   ;;  %vm103_vm2 = vcmask 519168   ;;  %s175_s1 = inlined_call_operand.vmem [shape: bf16[64,64], index: 1, kind: input, shape index: {}]   ;;  %s176_s0 = inlined_call_operand.vmem [shape: bf16[8,64], index: 0, kind: input, shape index: {}]   ;;  %s177_s2 = inlined_call_operand.vmem [shape: bf16[8,64], index: 2, kind: output, shape index: {}]  }
   0x1   :  { %119 = vmatprep.subr.bf16.mxu0 %v137_v0  ;;  %v133_v1 = vld [vmem:[%s175_s1 + $0x18] sm:$0xff]   ;;  %127 = vmatprep.mubr.msk.bf16.mxu0 %vm138_vm1, %v137_v0  ;;  %17 = vst.msk [vmem:[#allocation2] sm:$0xff] %vm16_vm0, %v137_v0  ;;  %v134_v2 = vld [vmem:[%s175_s1 + $0x10] sm:$0xff]   ;;  %v135_v3 = vld [vmem:[%s175_s1 + $0x8] sm:$0xff]  }
   0x2   :  { %120 = vmatpush3.bf16.msra.mxu0 %v133_v1  ;;  %v136_v4 = vld [vmem:[%s175_s1] sm:$0xff]  }
   0x3   :  { %121 = vmatprep.subr.bf16.mxu0 %v137_v0  ;;  %v19_v5 = vld [vmem:[%s176_s0] sm:$0xf] }
   0x6   :  { %122 = vmatpush3.bf16.msra.mxu0 %v134_v2 }
   0x7   :  { %123 = vmatprep.subr.bf16.mxu0 %v137_v0 }
   0x8   :  { %v18_v6 = vld [vmem:[#allocation2] sm:$0xff] }
   0xa   :  { %124 = vmatpush3.bf16.msra.mxu0 %v135_v3 }
   0xb   :  { %125 = vmatprep.subr.bf16.mxu0 %v137_v0 }
   0xe   :  { %126 = vmatpush3.bf16.msra.mxu0 %v136_v4 }
  0x11   :  { %128 = vmatmul.mubr.msk.bf16.vlgmr.msra.gmra.mxu0 %vm16_vm0, %v19_v5 }
  0xd1   :  { %v90_v7 = vpop.f32.mrf.mxu0 }
  0xd2   :  { %v96_v8 = vadd.f32 %v90_v7, %v18_v6 }
  0xd3   :  { %v129_v9 = vpop.f32.mrf.mxu0 }
  0xd4   :  { %97 = vst.msk [vmem:[#allocation2] sm:$0xff] %vm16_vm0, %v96_v8 }
  0xd5   :  { %v93_v10 = vpop.f32.mrf.mxu0 }
  0xd7   :  { %v130_v11 = vpop.f32.mrf.mxu0 }
  0xdb   :  { %v101_v12 = vld [vmem:[#allocation2] sm:$0xff] }
  0xdc   :  { %v102_v13 = vpack.c.bf16 %v101_v12, %v101_v12 }
  0xde   :  { %104 = vst.msk [vmem:[%s177_s2] sm:$0xf] %vm103_vm2, %v102_v13 }

// kernel: _lambda_.17
= control target key start
LH: loop header
LB: loop body
LE: loop exit
PB: predicated region body
PF: predicated region fallthrough
CT: control target
= control target key end

     0   :  { %s1171_s24 = smov 0   ;;  %s1173_s25 = smov 0   ;;  %s1288_s0 = inlined_call_operand.vmem [shape: bf16[4,8,16], index: 0, kind: input, shape index: {}]   ;;  %s1289_s1 = inlined_call_operand.vmem [shape: bf16[2,8,16], index: 1, kind: input, shape index: {}]   ;;  %s1290_s2 = inlined_call_operand.vmem [shape: bf16[2,8,16], index: 2, kind: input, shape index: {}]   ;;  %s1291_s3 = inlined_call_operand.vmem [shape: f32[8,8], index: 3, kind: input, shape index: {}, may-alias: {3,5}]   ;;  %s1292_s4 = inlined_call_operand.vmem [shape: f32[8,8], index: 4, kind: input, shape index: {}, may-alias: {4,6}]   ;;  %s1293_s5 = inlined_call_operand.vmem [shape: f32[8,8], index: 5, kind: input, shape index: {}, may-alias: {3,5}]   ;;  %s1294_s6 = inlined_call_operand.vmem [shape: f32[8,8], index: 6, kind: input, shape index: {}, may-alias: {4,6}]   ;;  %s1295_s7 = inlined_call_operand.vmem [shape: bf16[4,8,16], index: 7, kind: output, shape index: {}]  }
   0x1   :  { %s1175_s26 = smov 0  }
   0x2 LB: > { %s36_s27 = sadd.s32 1, %s1119_s25  ;;  %p1008_p0 = scmp.ge.s32.totalorder %s1123_s26, 1  ;;  %s1123_s26 = sphi %s1175_s26, %s17_s26   ;;  %s1119_s25 = sphi %s1173_s25, %s1297_s25   ;;  %s1115_s24 = sphi %s1171_s24, %s1296_s24  }
   0x3   : > { %p38_p1 = scmp.ge.s32.totalorder %s36_s27, 2  ;;  %p328_p2 = scmp.lt.s32.totalorder %s1123_s26, 3 }
   0x5   : > { %s1299_s27 = smov (%p38_p1, %s36_s27), 0  ;;  %p329_p3 = pnand %p1008_p0, %p328_p2 }
   0x6   : > { %p405_p4 = scmp.lt.s32.totalorder (!%p329_p3), %s1115_s24, 1  ;;  %s1125_s9 = smov (!%p329_p3), 8  }
   0x7   : > { %332 = sbr.rel (%p329_p3) target bundleno = 1031 (0x407), region = 48  ;;  %s1009_s19 = sshll.u32 (!%p329_p3), %s1115_s24, 1 }
   0x8   : > { %p397_p5 = scmp.lt.s32.totalorder (!%p329_p3), %s1009_s19, 3 }
   0xc   : > { %v516_v0 = vld [vmem:[%s1294_s6] sm:$0xff]  ;;  %s1201_s10 = scalar_select %p405_p4, %s1115_s24, 1  ;;  %vm454_vm0 = vcmask 130048   ;;  %v1126_v7 = vmov 0.0   ;;  %vm1127_vm1 = vmmov 0   ;;  %vm506_vm2 = vcmask 64512  }
   0xd   : > { %v515_v1 = vld [vmem:[%s1293_s5] sm:$0xff]  ;;  %519 = vrot.lane.b32.xlu0 %v516_v0, %s1125_s9  ;;  %s1301_s19 = smov (!%p397_p5, %s1009_s19), 3  ;;  %1033 = vmatprep.subr.bf16.mxu0 %v1126_v7  ;;  %455 = vst.msk [vmem:[#allocation4] sm:$0xff] %vm454_vm0, %v1126_v7  ;;  %456 = vst.msk [vmem:[#allocation4 + $0x8] sm:$0xff] %vm454_vm0, %v1126_v7  ;;  %s1128_s24 = smov 120   ;;  %vm449_vm3 = vcmask 7168   ;;  %v632_v48 = vlaneseq }
   0xe   : > { %529 = vrot.lane.b32.xlu1 %v515_v1, %s1125_s9  ;;  %v469_v2 = vld [vmem:[%s1292_s4] sm:$0xff]  ;;  %s1011_s15 = sshll.u32 %s1201_s10, 2  ;;  %s1010_s20 = sshll.u32 %s1301_s19, 2  ;;  %1039 = vmatprep.subr.bf16.mxu1 %v1126_v7  ;;  %v1129_v47 = vmov -inf   ;;  %452 = vst.msk [vmem:[#allocation3] sm:$0xff] %vm449_vm3, %v1126_v7  ;;  %453 = vst.msk [vmem:[#allocation3 + $0x8] sm:$0xff] %vm449_vm3, %v1126_v7 }
   0xf   : > { %v468_v3 = vld [vmem:[%s1291_s3] sm:$0xff]  ;;  %s411_s18 = scalar_lea.vmem %s1289_s1, %s1011_s15  ;;  %s403_s23 = scalar_lea.vmem %s1288_s0, %s1010_s20  ;;  %1035 = vmatprep.mubr.msk.bf16.mxu0 %vm1127_vm1, %v1126_v7  ;;  %1041 = vmatprep.mubr.msk.bf16.mxu1 %vm1127_vm1, %v1126_v7  ;;  %450 = vst.msk [vmem:[#allocation2] sm:$0xff] %vm449_vm3, %v1129_v47  ;;  %451 = vst.msk [vmem:[#allocation2 + $0x8] sm:$0xff] %vm449_vm3, %v1129_v47  ;;  %v633_v49 = vshrl.u32 %v632_v48, 7  ;;  %v637_v50 = vand.u32 127, %v632_v48  ;;  %v1130_v63 = vmov 0  }
  0x10   : > { %v513_v4 = vld [vmem:[%s411_s18] sm:$0xf]  ;;  %1087 = vset.pattern.permute.xlu0 %v1130_v63  ;;  %1088 = vset.pattern.permute.xlu1 %v1130_v63  ;;  %s418_s30 = scalar_lea.vmem %s1290_s2, %s1011_s15  ;;  %vm710_vm5 = vcmask 1043456   ;;  %s442_s10 = scalar_lea.vmem %s1295_s7, %s1010_s20  ;;  %vm826_vm6 = vcmask 125952  }
  0x11   : > { %473 = vrot.lane.b32.xlu0 %v469_v2, %s1125_s9  ;;  %v514_v5 = vunpack.c.l.bf16 %v513_v4  ;;  %v1022_v8 = vld [vmem:[%s403_s23] sm:$0xff]   ;;  %vm640_vm4 = vcmp.le.s32.totalorder %v637_v50, %v633_v49 }
  0x12   : > { %489 = vrot.lane.b32.xlu1 %v468_v3, %s1125_s9  ;;  %v1023_v9 = vunpack.c.l.bf16 %v1022_v8  ;;  %v1024_v14 = vunpack.c.h.bf16 %v1022_v8  ;;  %v690_v8 = vld [vmem:[%s418_s30] sm:$0xf] }
  0x13   : > { %v533_v6 = vmul.f32 %v516_v0, %v514_v5  ;;  %v517_v20 = vmul.f32 %v515_v1, %v514_v5 }
  0x14   : > { %v494_v12 = vmul.f32 %v1023_v9, %v469_v2  ;;  %v495_v16 = vmul.f32 %v1024_v14, %v469_v2  ;;  %v470_v26 = vmul.f32 %v1023_v9, %v468_v3  ;;  %v471_v34 = vmul.f32 %v1024_v14, %v468_v3 }
  0x15   : > { %535 = vrot.lane.b32.xlu0 %v533_v6, %s1125_s9 }
  0x16   : > { %v643_v0 = vld [vmem:[#allocation2] sm:$0xff]  ;;  %v644_v2 = vld [vmem:[#allocation2 + $0x8] sm:$0xff] }
  0x7f   : > { %v520_v10 = vpop.permute.xlu0 %519 }
  0x80   : > { %v522_v11 = vmul.f32 %v520_v10, %v514_v5  ;;  %v530_v18 = vpop.permute.xlu1 %529 }
  0x81   : > { %v532_v21 = vmul.f32 %v530_v18, %v514_v5 }
  0x82   : > { %524 = vrot.lane.b32.xlu1 %v522_v11, %s1128_s24 }
  0x83   : > { %v474_v13 = vpop.permute.xlu0 %473 }
  0x84   : > { %v476_v15 = vmul.f32 %v1023_v9, %v474_v13  ;;  %v477_v17 = vmul.f32 %v1024_v14, %v474_v13  ;;  %v490_v19 = vpop.permute.xlu1 %489 }
  0x85   : > { %v492_v27 = vmul.f32 %v1023_v9, %v490_v19  ;;  %v493_v36 = vmul.f32 %v1024_v14, %v490_v19  ;;  %v712_v9 = vsel %vm710_vm5, %v690_v8, 0 }
  0x86   : > { %498 = vrot.lane.b32.xlu1 %v494_v12, %s1125_s9  ;;  %480 = vrot.lane.b32.xlu0 %v476_v15, %s1128_s24 }
  0x87   : > { %v536_v22 = vpop.permute.xlu0 %535 }
  0x88   : > { %v538_v24 = vadd.f32 %v536_v22, %v532_v21 }
  0x8a   : > { %500 = vrot.lane.b32.xlu1 %v495_v16, %s1125_s9  ;;  %482 = vrot.lane.b32.xlu0 %v477_v17, %s1128_s24 }
  0xf4   : > { %v525_v23 = vpop.permute.xlu1 %524 }
  0xf5   : > { %v527_v25 = vsub.f32 %v517_v20, %v525_v23 }
  0xf7   : > { %v539_v28 = vsel %vm506_vm2, %v527_v25, %v538_v24 }
  0xf8   : > { %v499_v29 = vpop.permute.xlu1 %498  ;;  %v481_v30 = vpop.permute.xlu0 %480  ;;  %v540_v31 = vpack.c.bf16 %v539_v28, %v539_v28 }
  0xf9   : > { %v504_v32 = vadd.f32 %v499_v29, %v492_v27  ;;  %v486_v33 = vsub.f32 %v470_v26, %v481_v30  ;;  %v675_v26 = vld [vmem:[#allocation3] sm:$0xff]  ;;  %v676_v27 = vld [vmem:[#allocation3 + $0x8] sm:$0xff] }
  0xfa   : > { %v546_v35 = vsel %vm454_vm0, %v540_v31, 0 }
  0xfb   : > { %v507_v37 = vsel %vm506_vm2, %v486_v33, %v504_v32  ;;  %1034 = vmatpush3.bf16.xpose.msra.mxu0 %v546_v35  ;;  %1040 = vmatpush3.bf16.xpose.msra.mxu1 %v546_v35 }
  0xfc   : > { %v509_v38 = vmul.f32 0.25, %v507_v37  ;;  %v501_v39 = vpop.permute.xlu1 %500  ;;  %v483_v40 = vpop.permute.xlu0 %482  ;;  %1045 = vmatprep.subr.bf16.mxu0 %v1126_v7  ;;  %1051 = vmatprep.subr.bf16.mxu1 %v1126_v7 }
  0xfd   : > { %v505_v41 = vadd.f32 %v501_v39, %v493_v36  ;;  %v487_v42 = vsub.f32 %v471_v34, %v483_v40  ;;  %v692_v40 = vld [vmem:[#allocation4 + $0x8] sm:$0xff] }
  0xfe   : > { %v511_v44 = vpack.c.bf16 %v509_v38, %v509_v38  ;;  %v691_v38 = vld [vmem:[#allocation4] sm:$0xff] }
  0xff   : > { %v508_v43 = vsel %vm506_vm2, %v487_v42, %v505_v41 }
 0x100   : > { %v510_v45 = vmul.f32 0.25, %v508_v43 }
 0x102   : > { %v512_v46 = vpack.c.bf16 %v510_v45, %v510_v45  ;;  %1036 = vmatmul.mubr.msk.bf16.vlgmr.msra.gmra.mxu0 %vm454_vm0, %v511_v44 }
 0x103   : > { %1047 = vmatprep.mubr.msk.bf16.mxu0 %vm1127_vm1, %v1126_v7  ;;  %1046 = vmatpush3.bf16.msra.mxu0 %v712_v9 }
 0x104   : > { %1042 = vmatmul.mubr.msk.bf16.vlgmr.msra.gmra.mxu1 %vm454_vm0, %v512_v46 }
 0x105   : > { %1053 = vmatprep.mubr.msk.bf16.mxu1 %vm1127_vm1, %v1126_v7  ;;  %1052 = vmatpush3.bf16.msra.mxu1 %v712_v9 }
 0x1c2   : > { %v582_v51 = vpop.f32.mrf.mxu0 }
 0x1c3   : > { %v641_v52 = vsel %vm640_vm4, %v582_v51, -inf }
 0x1c4   : > { %v1037_v53 = vpop.f32.mrf.mxu0  ;;  %v625_v54 = vpop.f32.mrf.mxu1  ;;  %v645_v55 = vsel %vm506_vm2, %v641_v52, -inf }
 0x1c5   : > { %v642_v56 = vsel %vm640_vm4, %v625_v54, -inf  ;;  %646 = vmax.xlane.f32.xlu0 %v645_v55 }
 0x1c6   : > { %v585_v57 = vpop.f32.mrf.mxu0  ;;  %v1043_v58 = vpop.f32.mrf.mxu1  ;;  %v648_v59 = vsel %vm506_vm2, %v642_v56, -inf }
 0x1c7   : > { %649 = vmax.xlane.f32.xlu1 %v648_v59 }
 0x1c8   : > { %v1038_v60 = vpop.f32.mrf.mxu0  ;;  %v628_v61 = vpop.f32.mrf.mxu1 }
 0x1ca   : > { %v1044_v62 = vpop.f32.mrf.mxu1 }
 0x24e   : > { %v647_v1 = vpop.xlane.xlu0 %646 }
 0x24f   : > { %v651_v3 = vmax.f32 %v643_v0, %v647_v1 }
 0x250   : > { %v650_v4 = vpop.xlane.xlu1 %649 }
 0x251   : > { %v653_v5 = vsub.f32 %v643_v0, %v651_v3  ;;  %801 = vst.msk [vmem:[#allocation2] sm:$0xff] %vm449_vm3, %v651_v3  ;;  %v652_v6 = vmax.f32 %v644_v2, %v650_v4  ;;  %661 = vperm.xlu0 %1087, %v651_v3  }
 0x253   : > { %v654_v7 = vsub.f32 %v644_v2, %v652_v6  ;;  %802 = vst.msk [vmem:[#allocation2 + $0x8] sm:$0xff] %vm449_vm3, %v652_v6  ;;  %666 = vperm.xlu1 %1088, %v652_v6   ;;  %v655_v17 = vmul.f32 1.442695, %v653_v5 }
 0x255   : > { %v657_v23 = vmul.f32 1.442695, %v654_v7 }
 0x2cc   : > { %v662_v10 = vpop.permute.xlu0 %661 }
 0x2cd   : > { %v669_v11 = vsub.f32 %v641_v52, %v662_v10 }
 0x2ce   : > { %v667_v12 = vpop.permute.xlu1 %666 }
 0x2cf   : > { %v671_v13 = vmul.f32 1.442695, %v669_v11  ;;  %v670_v14 = vsub.f32 %v642_v56, %v667_v12 }
 0x2d1   : > { %1089 = vpow2.f32 %v671_v13  ;;  %v673_v15 = vmul.f32 1.442695, %v670_v14 }
 0x2d3   : > { %1091 = vpow2.f32 %v673_v15 }
 0x2d4   : > { %1093 = vpow2.f32 %v655_v17 }
 0x2d5   : > { %1095 = vpow2.f32 %v657_v23 }
 0x2de   : > { %v1090_v16 = vpop.eup %1089 }
 0x2df   : > { %v679_v18 = vsel %vm506_vm2, %v1090_v16, 0.0  ;;  %v705_v19 = vpack.c.bf16 %v1090_v16, %v1090_v16 }
 0x2e0   : > { %v1092_v20 = vpop.eup %1091  ;;  %680 = vadd.xlane.f32.xlu1 %v679_v18 }
 0x2e1   : > { %1048 = vmatmul.mubr.msk.bf16.vlgmr.msra.gmra.mxu0 %vm506_vm2, %v705_v19  ;;  %v682_v21 = vsel %vm506_vm2, %v1092_v20, 0.0  ;;  %v706_v22 = vpack.c.bf16 %v1092_v20, %v1092_v20  ;;  %v1094_v24 = vpop.eup %1093 }
 0x2e2   : > { %683 = vadd.xlane.f32.xlu0 %v682_v21  ;;  %v1096_v25 = vpop.eup %1095  ;;  %v677_v28 = vmul.f32 %v1094_v24, %v675_v26 }
 0x2e3   : > { %1054 = vmatmul.mubr.msk.bf16.vlgmr.msra.gmra.mxu1 %vm506_vm2, %v706_v22  ;;  %v678_v31 = vmul.f32 %v1096_v25, %v676_v27 }
 0x2f1   : > { %695 = vperm.xlu1 %1088, %v1094_v24  }
 0x2f8   : > { %700 = vperm.xlu0 %1087, %v1096_v25  }
 0x369   : > { %v681_v29 = vpop.xlane.xlu1 %680 }
 0x36a   : > { %v685_v30 = vadd.f32 %v681_v29, %v677_v28 }
 0x36b   : > { %v684_v32 = vpop.xlane.xlu0 %683 }
 0x36c   : > { %688 = vst.msk [vmem:[#allocation3] sm:$0xff] %vm449_vm3, %v685_v30  ;;  %v686_v33 = vadd.f32 %v684_v32, %v678_v31 }
 0x36d   : > { %v696_v39 = vpop.permute.xlu1 %695 }
 0x36e   : > { %689 = vst.msk [vmem:[#allocation3 + $0x8] sm:$0xff] %vm449_vm3, %v686_v33  ;;  %v703_v42 = vmul.f32 %v696_v39, %v691_v38 }
 0x373   : > { %v806_v34 = vld [vmem:[#allocation3] sm:$0xff]  ;;  %v701_v41 = vpop.permute.xlu0 %700 }
 0x374   : > { %1097 = vrcp.f32 %v806_v34  ;;  %v704_v44 = vmul.f32 %v701_v41, %v692_v40 }
 0x375   : > { %v807_v35 = vld [vmem:[#allocation3 + $0x8] sm:$0xff] }
 0x376   : > { %1099 = vrcp.f32 %v807_v35 }
 0x381   : > { %v1098_v36 = vpop.eup %1097 }
 0x382   : > { %814 = vperm.xlu1 %1088, %v1098_v36  }
 0x383   : > { %v1100_v37 = vpop.eup %1099 }
 0x386   : > { %819 = vperm.xlu1 %1088, %v1100_v37  }
 0x3a1   : > { %v748_v43 = vpop.f32.mrf.mxu0 }
 0x3a2   : > { %v797_v45 = vadd.f32 %v748_v43, %v703_v42 }
 0x3a3   : > { %v1049_v46 = vpop.f32.mrf.mxu0  ;;  %v791_v47 = vpop.f32.mrf.mxu1 }
 0x3a4   : > { %799 = vst.msk [vmem:[#allocation4] sm:$0xff] %vm454_vm0, %v797_v45  ;;  %v798_v48 = vadd.f32 %v791_v47, %v704_v44 }
 0x3a5   : > { %v751_v49 = vpop.f32.mrf.mxu0  ;;  %v1055_v50 = vpop.f32.mrf.mxu1 }
 0x3a6   : > { %800 = vst.msk [vmem:[#allocation4 + $0x8] sm:$0xff] %vm454_vm0, %v798_v48 }
 0x3a7   : > { %v1050_v51 = vpop.f32.mrf.mxu0  ;;  %v794_v52 = vpop.f32.mrf.mxu1 }
 0x3a9   : > { %v1056_v53 = vpop.f32.mrf.mxu1 }
 0x3ab   : > { %v810_v55 = vld [vmem:[#allocation4] sm:$0xff] }
 0x3ad   : > { %v811_v58 = vld [vmem:[#allocation4 + $0x8] sm:$0xff] }
 0x3fd   : > { %v815_v54 = vpop.permute.xlu1 %814 }
 0x3fe   : > { %v822_v56 = vmul.f32 %v815_v54, %v810_v55 }
 0x400   : > { %v824_v57 = vpack.c.bf16 %v822_v56, %v822_v56 }
 0x401   : > { %v820_v59 = vpop.permute.xlu1 %819 }
 0x402   : > { %827 = vst.msk [vmem:[%s442_s10] sm:$0xf] %vm826_vm6, %v824_v57  ;;  %v823_v60 = vmul.f32 %v820_v59, %v811_v58 }
 0x404   : > { %v825_v61 = vpack.c.bf16 %v823_v60, %v823_v60 }
 0x406   : > { %828 = vst.msk [vmem:[%s442_s10 + $0x4] sm:$0xf] %vm826_vm6, %v825_v61 }
 0x407 PF: > { %s17_s26 = sadd.s32 1, %s1123_s26   ;;  %s1296_s24 = smov %s1119_s25 }
 0x408   : > { %p14_p6 = scmp.ge.s32.totalorder %s17_s26, 4   ;;  %s1297_s25 = smov %s1299_s27 }
 0x40a   :  { %16 = sbr.rel (!%p14_p6) target bundleno = 2 (0x2), region = 108 }

// kernel: _lambda_.19
= control target key start
LH: loop header
LB: loop body
LE: loop exit
PB: predicated region body
PF: predicated region fallthrough
CT: control target
= control target key end

     0   :  { %vm22_vm0 = vcmask 519168   ;;  %vm25_vm1 = vcmask 523264   ;;  %v36_v11 = vlaneseq  ;;  %s95_s0 = inlined_call_operand.vmem [shape: bf16[8,64], index: 0, kind: input, shape index: {}]   ;;  %s96_s1 = inlined_call_operand.vmem [shape: bf16[8,64], index: 1, kind: input, shape index: {}]   ;;  %s97_s4 = inlined_call_operand.vmem [shape: bf16[8,64], index: 4, kind: output, shape index: {1}]   ;;  %s98_s2 = inlined_call_operand.vmem [shape: bf16[1,64], index: 2, kind: input, shape index: {}]   ;;  %s99_s3 = inlined_call_operand.vmem [shape: bf16[8,64], index: 3, kind: output, shape index: {0}]  }
   0x1   :  { %v16_v0 = vld [vmem:[%s95_s0] sm:$0xf] }
   0x2   :  { %v18_v1 = vld [vmem:[%s96_s1] sm:$0xf]  ;;  %v17_v2 = vunpack.c.l.bf16 %v16_v0  ;;  %v37_v12 = vshrl.u32 %v36_v11, 7 }
   0x3   :  { %v19_v3 = vunpack.c.l.bf16 %v18_v1  ;;  %v34_v13 = vld [vmem:[%s98_s2] sm:$0x1] }
   0x4   :  { %v35_v14 = vunpack.c.l.bf16 %v34_v13  ;;  %v38_v15 = vsub.s32 0, %v37_v12 }
   0x5   :  { %v20_v4 = vadd.f32 %v19_v3, %v17_v2 }
   0x6   :  { %v39_v16 = vrot.slane %v35_v14, %v38_v15 }
   0x7   :  { %v21_v5 = vpack.c.bf16 %v20_v4, %v20_v4  ;;  %v24_v6 = vmul.f32 %v20_v4, %v20_v4 }
   0x9   :  { %23 = vst.msk [vmem:[%s97_s4] sm:$0xf] %vm22_vm0, %v21_v5  ;;  %v26_v7 = vsel %vm25_vm1, %v24_v6, 0.0 }
   0xa   :  { %27 = vadd.xlane.f32.xlu0 %v26_v7 }
  0x93   :  { %v28_v8 = vpop.xlane.xlu0 %27 }
  0x94   :  { %v30_v9 = vmul.f32 0.015625, %v28_v8 }
  0x96   :  { %v31_v10 = vadd.f32 1e-05, %v30_v9 }
  0x98   :  { %51 = vrsqrt.f32 %v31_v10 }
  0xa5   :  { %v52_v17 = vpop.eup %51 }
  0xa6   :  { %v33_v18 = vmul.f32 %v52_v17, %v20_v4 }
  0xa8   :  { %v40_v19 = vmul.f32 %v39_v16, %v33_v18 }
  0xaa   :  { %v41_v20 = vpack.c.bf16 %v40_v19, %v40_v19 }
  0xac   :  { %42 = vst.msk [vmem:[%s99_s3] sm:$0xf] %vm22_vm0, %v41_v20 }

// kernel: _lambda_.20
= control target key start
LH: loop header
LB: loop body
LE: loop exit
PB: predicated region body
PF: predicated region fallthrough
CT: control target
= control target key end

     0   :  { %v160_v1 = vmov 0   ;;  %vm69_vm0 = vcmask 523264   ;;  %s206_s1 = inlined_call_operand.vmem [shape: bf16[64,256], index: 1, kind: input, shape index: {}]   ;;  %s207_s0 = inlined_call_operand.vmem [shape: bf16[8,64], index: 0, kind: input, shape index: {}]   ;;  %s208_s2 = inlined_call_operand.vmem [shape: bf16[8,256], index: 2, kind: output, shape index: {}]  }
   0x1   :  { %v148_v0 = vld [vmem:[%s206_s1 + $0x34] ss:$8 sps:$4 sm:$0xff]   ;;  %105 = vmatprep.mubr.bf16.mxu0 %v160_v1  ;;  %v150_v2 = vld [vmem:[%s206_s1 + $0x30] ss:$8 sps:$4 sm:$0xff]   ;;  %v151_v3 = vld [vmem:[%s206_s1 + $0x24] ss:$8 sps:$4 sm:$0xff]  }
   0x2   :  { %81 = vmatprep.subr.bf16.mxu0 %v148_v0  ;;  %v153_v4 = vld [vmem:[%s206_s1 + $0x20] ss:$8 sps:$4 sm:$0xff]   ;;  %v154_v5 = vld [vmem:[%s206_s1 + $0x14] ss:$8 sps:$4 sm:$0xff]   ;;  %v156_v6 = vld [vmem:[%s206_s1 + $0x10] ss:$8 sps:$4 sm:$0xff]  }
   0x3   :  { %82 = vmatpush1.bf16.msra.mxu0 %v150_v2  ;;  %v157_v7 = vld [vmem:[%s206_s1 + $0x4] ss:$8 sps:$4 sm:$0xff]   ;;  %v159_v8 = vld [vmem:[%s206_s1] ss:$8 sps:$4 sm:$0xff]  }
   0x4   :  { %83 = vmatprep.subr.bf16.mxu0 %v151_v3  ;;  %v20_v9 = vld [vmem:[%s207_s0] sm:$0xf] }
   0x7   :  { %84 = vmatpush1.bf16.msra.mxu0 %v153_v4 }
   0x8   :  { %85 = vmatprep.subr.bf16.mxu0 %v154_v5 }
   0xb   :  { %86 = vmatpush1.bf16.msra.mxu0 %v156_v6 }
   0xc   :  { %87 = vmatprep.subr.bf16.mxu0 %v157_v7 }
   0xf   :  { %88 = vmatpush1.bf16.msra.mxu0 %v159_v8 }
  0x12   :  { %144 = vmatmul.mubr.msk.bf16.vlgmr.msra.gmra.mxu0 %vm69_vm0, %v20_v9 }
  0xd2   :  { %v107_v10 = vpop.f32.mrf.mxu0 }
  0xd4   :  { %v109_v11 = vpop.f32.mrf.mxu0 }
  0xd5   :  { %v146_v12 = vpack.c.bf16 %v109_v11, %v107_v10 }
  0xd6   :  { %v111_v13 = vpop.f32.mrf.mxu0 }
  0xd7   :  { %131 = vst [vmem:[%s208_s2] sm:$0xff] %v146_v12 }
  0xd8   :  { %v112_v14 = vpop.f32.mrf.mxu0 }

// kernel: _lambda_.21
= control target key start
LH: loop header
LB: loop body
LE: loop exit
PB: predicated region body
PF: predicated region fallthrough
CT: control target
= control target key end

     0   :  { %vm36_vm0 = vcmask 523264   ;;  %v229_v0 = vmov 0.0   ;;  %vm230_vm1 = vmmov 0   ;;  %vm164_vm2 = vcmask 519168   ;;  %s286_s2 = inlined_call_operand.vmem [shape: bf16[128,64], index: 2, kind: input, shape index: {}]   ;;  %s287_s0 = inlined_call_operand.vmem [shape: bf16[8,256], index: 0, kind: input, shape index: {}, may-alias: {0,1}]   ;;  %s288_s1 = inlined_call_operand.vmem [shape: bf16[8,256], index: 1, kind: input, shape index: {}, may-alias: {0,1}]   ;;  %s289_s3 = inlined_call_operand.vmem [shape: bf16[8,64], index: 3, kind: output, shape index: {}]  }
   0x1   :  { %195 = vmatprep.subr.bf16.mxu0 %v229_v0  ;;  %v217_v1 = vld [vmem:[%s286_s2 + $0x38] sm:$0xff]   ;;  %211 = vmatprep.mubr.msk.bf16.mxu0 %vm230_vm1, %v229_v0  ;;  %37 = vst.msk [vmem:[#allocation2] sm:$0xff] %vm36_vm0, %v229_v0  ;;  %v218_v2 = vld [vmem:[%s286_s2 + $0x30] sm:$0xff]   ;;  %v219_v3 = vld [vmem:[%s286_s2 + $0x28] sm:$0xff]  }
   0x2   :  { %196 = vmatpush3.bf16.msra.mxu0 %v217_v1  ;;  %v38_v4 = vld [vmem:[%s287_s0] sm:$0xf]  ;;  %v221_v8 = vld [vmem:[%s286_s2 + $0x18] sm:$0xff]   ;;  %v222_v9 = vld [vmem:[%s286_s2 + $0x10] sm:$0xff]  }
   0x3   :  { %197 = vmatprep.subr.bf16.mxu0 %v229_v0  ;;  %v39_v5 = vunpack.c.l.bf16 %v38_v4  ;;  %v220_v6 = vld [vmem:[%s286_s2 + $0x20] sm:$0xff]   ;;  %v223_v10 = vld [vmem:[%s286_s2 + $0x8] sm:$0xff]  }
   0x4   :  { %v224_v12 = vld [vmem:[%s286_s2] sm:$0xff]  }
   0x5   :  { %v177_v7 = vmul.f32 -1.442695, %v39_v5  ;;  %v176_v14 = vld [vmem:[%s288_s1 + $0x4] sm:$0xf] }
   0x6   :  { %198 = vmatpush3.bf16.msra.mxu0 %v218_v2  ;;  %v41_v15 = vunpack.c.l.bf16 %v176_v14 }
   0x7   :  { %199 = vmatprep.subr.bf16.mxu0 %v229_v0  ;;  %225 = vpow2.f32 %v177_v7 }
   0x8   :  { %v51_v20 = vld [vmem:[#allocation2] sm:$0xff] }
   0xa   :  { %200 = vmatpush3.bf16.msra.mxu0 %v219_v3 }
   0xb   :  { %201 = vmatprep.subr.bf16.mxu0 %v229_v0 }
   0xe   :  { %202 = vmatpush3.bf16.msra.mxu0 %v220_v6 }
   0xf   :  { %203 = vmatprep.subr.bf16.mxu0 %v229_v0 }
  0x12   :  { %204 = vmatpush3.bf16.msra.mxu0 %v221_v8 }
  0x13   :  { %205 = vmatprep.subr.bf16.mxu0 %v229_v0 }
  0x14   :  { %v226_v11 = vpop.eup %225 }
  0x15   :  { %v45_v13 = vadd.f32 1.0, %v226_v11 }
  0x16   :  { %206 = vmatpush3.bf16.msra.mxu0 %v222_v9 }
  0x17   :  { %207 = vmatprep.subr.bf16.mxu0 %v229_v0  ;;  %227 = vrcp.f32 %v45_v13 }
  0x1a   :  { %208 = vmatpush3.bf16.msra.mxu0 %v223_v10 }
  0x1b   :  { %209 = vmatprep.subr.bf16.mxu0 %v229_v0 }
  0x1e   :  { %210 = vmatpush3.bf16.msra.mxu0 %v224_v12 }
  0x24   :  { %v228_v16 = vpop.eup %227 }
  0x25   :  { %v48_v17 = vmul.f32 %v228_v16, %v39_v5 }
  0x27   :  { %v49_v18 = vmul.f32 %v48_v17, %v41_v15 }
  0x29   :  { %v50_v19 = vpack.c.bf16 %v49_v18, %v49_v18 }
  0x2b   :  { %212 = vmatmul.mubr.bf16.vlgmr.msra.gmra.mxu0 %v50_v19 }
  0xeb   :  { %v150_v21 = vpop.f32.mrf.mxu0 }
  0xec   :  { %v156_v22 = vadd.f32 %v150_v21, %v51_v20 }
  0xed   :  { %v213_v23 = vpop.f32.mrf.mxu0 }
  0xee   :  { %158 = vst.msk [vmem:[#allocation2] sm:$0xff] %vm36_vm0, %v156_v22 }
  0xef   :  { %v153_v24 = vpop.f32.mrf.mxu0 }
  0xf1   :  { %v214_v25 = vpop.f32.mrf.mxu0 }
  0xf5   :  { %v162_v26 = vld [vmem:[#allocation2] sm:$0xff] }
  0xf6   :  { %v163_v27 = vpack.c.bf16 %v162_v26, %v162_v26 }
  0xf8   :  { %165 = vst.msk [vmem:[%s289_s3] sm:$0xf] %vm164_vm2, %v163_v27 }

// kernel: _lambda_.29
= control target key start
LH: loop header
LB: loop body
LE: loop exit
PB: predicated region body
PF: predicated region fallthrough
CT: control target
= control target key end

     0   :  { %10 = vsyncpa [#allocation3], 0  ;;  %s165_s0 = inlined_call_operand.vmem [shape: bf16[8,64], index: 0, kind: input, shape index: {}]   ;;  %s166_s1 = inlined_call_operand.vmem [shape: bf16[8,64], index: 1, kind: input, shape index: {}]   ;;  %s167_s2 = inlined_call_operand.vmem [shape: bf16[1,64], index: 2, kind: input, shape index: {}]   ;;  %s168_s3 = inlined_call_operand.hbm [shape: bf16[8,64], index: 3, kind: output, shape index: {0}]   ;;  %s169_s4 = inlined_call_operand.hbm [shape: bf16[8,64], index: 4, kind: output, shape index: {1}]  }
   0x1   :  { %v18_v0 = vld [vmem:[%s165_s0] sm:$0xf] }
   0x2   :  { %v20_v1 = vld [vmem:[%s166_s1] sm:$0xf]  ;;  %v19_v2 = vunpack.c.l.bf16 %v18_v0 }
   0x3   :  { %v21_v3 = vunpack.c.l.bf16 %v20_v1 }
   0x4   :  { %11 = vsyncpa [#allocation5], 0  ;;  %vm27_vm0 = vcmask 523264   ;;  %vm24_vm1 = vcmask 519168   ;;  %s121_s19 = smov [#allocation4]  }
   0x5   :  { %v22_v4 = vadd.f32 %v21_v3, %v19_v2  ;;  %s61_s20 = sshll.u32 %s121_s19, 4  ;;  %s62_s20 = int_to_ptr.vmem [resolvable:$true] %s61_s20 }
   0x6   :  { %s77_s0 = scalar_lea.vmem %s62_s20, 64  ;;  %p82_p1 = scmp.lt.s32.totalorder %s62_s20, %s62_s20 }
   0x7   :  { %v26_v5 = vmul.f32 %v22_v4, %v22_v4  ;;  %v23_v7 = vpack.c.bf16 %v22_v4, %v22_v4  ;;  %p78_p0 = scmp.ne.s32.totalorder %s62_s20, %s77_s0  ;;  %p83_p2 = scmp.lt.s32.totalorder %s77_s0, %s77_s0 }
   0x9   :  { %v28_v6 = vsel %vm27_vm0, %v26_v5, 0.0  ;;  %25 = vst.msk [vmem:[#allocation4] sm:$0xf] %vm24_vm1, %v23_v7  ;;  %p84_p3 = por %p83_p2, %p82_p1 }
   0xa   :  { %29 = vadd.xlane.f32.xlu0 %v28_v6 }
   0xb   :  { %p85_p4 = pnand %p84_p3, %p78_p0 }
   0xd   :  { %88 = shalt.err (!%p85_p4)
}
   0xe   :  { %64 = dma.vmem_to_hbm [thread:$0]  %s62_s20, 64, %s169_s4, [#allocation5]   ;;  %v38_v11 = vlaneseq  ;;  %v36_v13 = vld [vmem:[%s167_s2] sm:$0x1] }
   0xf   :  { %v37_v14 = vunpack.c.l.bf16 %v36_v13  ;;  %s122_s24 = smov [#allocation2]  }
  0x10   :  { %v39_v12 = vshrl.u32 %v38_v11, 7  ;;  %s51_s25 = sshll.u32 %s122_s24, 4  ;;  %s52_s25 = int_to_ptr.vmem [resolvable:$true] %s51_s25 }
  0x11   :  { %s97_s4 = scalar_lea.vmem %s52_s25, 64  ;;  %p102_p6 = scmp.lt.s32.totalorder %s52_s25, %s52_s25 }
  0x12   :  { %v40_v15 = vsub.s32 0, %v39_v12  ;;  %p98_p5 = scmp.ne.s32.totalorder %s52_s25, %s97_s4  ;;  %p103_p7 = scmp.lt.s32.totalorder %s97_s4, %s97_s4 }
  0x14   :  { %v41_v16 = vrot.slane %v37_v14, %v40_v15  ;;  %p104_p8 = por %p103_p7, %p102_p6 }
  0x16   :  { %p105_p9 = pnand %p104_p8, %p98_p5 }
  0x93   :  { %v30_v8 = vpop.xlane.xlu0 %29 }
  0x94   :  { %v32_v9 = vmul.f32 0.015625, %v30_v8 }
  0x96   :  { %v33_v10 = vadd.f32 1e-05, %v32_v9 }
  0x98   :  { %75 = vrsqrt.f32 %v33_v10 }
  0xa5   :  { %v76_v17 = vpop.eup %75 }
  0xa6   :  { %v35_v18 = vmul.f32 %v76_v17, %v22_v4 }
  0xa8   :  { %v42_v19 = vmul.f32 %v41_v16, %v35_v18 }
  0xaa   :  { %v43_v20 = vpack.c.bf16 %v42_v19, %v42_v19 }
  0xac   :  { %44 = vst.msk [vmem:[#allocation2] sm:$0xf] %vm24_vm1, %v43_v20 }
  0xad   :  { %108 = shalt.err (!%p105_p9)
}
  0xae   :  { %54 = dma.vmem_to_hbm [thread:$0]  %s52_s25, 64, %s168_s3, [#allocation3]  }
  0xaf   :  { %117 = dma.done.wait [#allocation3], 64  }
  0xb0   :  { %118 = vsyncadd [#allocation3], 4294967232 }
  0xb1   :  { %119 = dma.done.wait [#allocation5], 64  }
  0xb2   :  { %120 = vsyncadd [#allocation5], 4294967232 }
  0xb3   :  { %71 = vsyncpa [#allocation3], 1 }
  0xb4   :  { %72 = vsyncpa [#allocation5], 1 }

</bundles_post_ra>
